<compile_context>
chip_gen: v5e
topology: v5e:2x2
jax: 0.10.0
libtpu: 0.0.40
codegen_flags: <defaults>
</compile_context>

<pallas_src>
import jax
import jax.numpy as jnp
import numpy as np
from jax.experimental import pallas as pl
from jax.experimental.pallas import tpu as pltpu


_ALIGN = 16                        # batch-tile granularity (sublane-safe for f32/bf16)
_VMEM_BUDGET = 44 * 1024 * 1024    # per-step operand+temp budget (fits v7x 64 MiB/TC)


def _round_up(n, m):
    return ((n + m - 1) // m) * m


def _lane_pad(n):
    # Trailing dim padded to the 128-lane vreg width (VMEM footprint estimate).
    return _round_up(max(int(n), 1), 128)


def _block_diag_selector(n_groups, group_size):
    """(n_groups*group_size, n_groups) 0/1 selector: S[m, j] = 1 iff m // group_size == j.

    Built without vector integer division (compare against j*group_size bounds).
    0/1 is exactly representable in bf16, so the MXU segmented sum is exact per term.
    """
    rows = n_groups * group_size
    m = jax.lax.broadcasted_iota(jnp.int32, (rows, n_groups), 0)
    j0 = jax.lax.broadcasted_iota(jnp.int32, (rows, n_groups), 1) * group_size
    sel = jnp.where((m >= j0) & (m < j0 + group_size), 1.0, 0.0)
    return sel.astype(jnp.bfloat16)


def _mxu_segment_sum(prod_f32, sel_bf16):
    """Segmented lane-sum of an f32 product on the MXU with ~f32 accuracy.

    The f32 product is split into bf16 hi/lo parts; each part multiplies the
    exact 0/1 selector with f32 accumulation (preferred_element_type), so the
    only error is the ~2^-18 relative truncation of the residual.
    """
    hi = prod_f32.astype(jnp.bfloat16)
    lo = (prod_f32 - hi.astype(jnp.float32)).astype(jnp.bfloat16)
    out = jnp.dot(hi, sel_bf16, preferred_element_type=jnp.float32)
    return out + jnp.dot(lo, sel_bf16, preferred_element_type=jnp.float32)


def _per_example_mlp_kernel(x_ref, w1_ref, b1_ref, w2_ref, b2_ref, o_ref):
    """One grid step == one (tb, ...) slab of examples, processed in one shot."""
    f32 = jnp.float32
    d_in = x_ref.shape[-1]
    h_dim = b1_ref.shape[-1]
    d_out = b2_ref.shape[-1]

    x = x_ref[...].astype(f32)       # (tb, D_in)
    w1 = w1_ref[...].astype(f32)     # (tb, H*D_in)   lane-dense
    b1 = b1_ref[...].astype(f32)     # (tb, H)
    w2 = w2_ref[...].astype(f32)     # (tb, D_out*H)  lane-dense
    b2 = b2_ref[...].astype(f32)     # (tb, D_out)

    # Constant block-diagonal selectors for the MXU segmented sums.
    s1 = _block_diag_selector(h_dim, d_in)     # (H*D_in, H)
    s2 = _block_diag_selector(d_out, h_dim)    # (D_out*H, D_out)

    # child 0: Linear(D_in, H) with per-example weight/bias.
    prod1 = w1 * jnp.tile(x, (1, h_dim))            # (tb, H*D_in)   VPU
    h = _mxu_segment_sum(prod1, s1) + b1            # (tb, H)        MXU, f32 acc
    # child 1: ReLU (parameter-free child applied as-is).
    h = jnp.maximum(h, 0.0)
    # child 2: Linear(H, D_out) with per-example weight/bias.
    prod2 = w2 * jnp.tile(h, (1, d_out))            # (tb, D_out*H)  VPU
    y = _mxu_segment_sum(prod2, s2) + b2            # (tb, D_out)    MXU, f32 acc

    o_ref[...] = y.astype(o_ref.dtype)


def _choose_tile(B, d_in, h_dim, d_out, w_itemsize, x_itemsize, out_itemsize):
    """Derive the batch tile and vmem limit from the problem size."""
    # Pipelined operand/output blocks are double-buffered (x2); in-kernel
    # temporaries (tiled x/h, products, hi/lo parts) roughly single-buffered.
    io = 2 * (_lane_pad(d_in) * x_itemsize
              + _lane_pad(h_dim * d_in) * w_itemsize
              + _lane_pad(h_dim) * 4
              + _lane_pad(d_out * h_dim) * w_itemsize
              + _lane_pad(d_out) * 4
              + _lane_pad(d_out) * out_itemsize)
    tmp = 4 * (3 * _lane_pad(h_dim * d_in) + 3 * _lane_pad(d_out * h_dim)
               + 4 * _lane_pad(h_dim) + 3 * _lane_pad(d_out) + _lane_pad(d_in))
    per_ex = io + tmp

    tb = max(_ALIGN, (_VMEM_BUDGET // per_ex) // _ALIGN * _ALIGN)
    if B >= 2 * _ALIGN:
        # Keep >= 2 grid steps so v7x's two TensorCores both get work.
        tb = min(tb, _round_up(pl.cdiv(B, 2), _ALIGN))
    if tb >= B:
        # Single full-batch block; block dim == full array dim is always legal.
        tb = B

    sel_bytes = (_round_up(h_dim * d_in, 16) * _lane_pad(h_dim)
                 + _round_up(d_out * h_dim, 16) * _lane_pad(d_out)) * 2  # bf16
    vmem_limit = int(per_ex * tb + sel_bytes + (8 << 20))
    return tb, vmem_limit


def per_example_params_net(x, w1, b1, w2, b2, *, weight_dtype=None):
    """Forward pass of PerExampleParamsNet(Sequential(Linear, ReLU, Linear)).

    x : (B, D_in); w1: (B, H, D_in); b1: (B, H); w2: (B, D_out, H); b2: (B, D_out)
    returns (B, D_out).  `weight_dtype=jnp.bfloat16` halves the dominant HBM
    bytes (accumulation stays f32 in-kernel).
    """
    B, d_in = x.shape
    h_dim = w1.shape[1]
    d_out = w2.shape[1]
    assert w1.shape == (B, h_dim, d_in) and b1.shape == (B, h_dim)
    assert w2.shape == (B, d_out, h_dim) and b2.shape == (B, d_out)
    out_dtype = x.dtype

    # Lane-dense 2-D weight slabs (free reshapes of contiguous HBM arrays).
    w1f = w1.reshape(B, h_dim * d_in)
    w2f = w2.reshape(B, d_out * h_dim)
    if weight_dtype is not None:
        w1f = w1f.astype(weight_dtype)
        w2f = w2f.astype(weight_dtype)

    w_itemsize = jnp.dtype(w1f.dtype).itemsize
    tb, vmem_limit = _choose_tile(B, d_in, h_dim, d_out, w_itemsize,
                                  jnp.dtype(x.dtype).itemsize,
                                  jnp.dtype(out_dtype).itemsize)
    grid = (pl.cdiv(B, tb),)
    # Ragged last block: garbage rows never mix into valid rows (row-independent
    # compute) and their writeback is masked by Pallas, so no batch padding is
    # needed (jnp.pad would copy the full weight tensors in HBM).

    mul_flops = B * (h_dim * d_in + d_out * h_dim)
    mxu_flops = 4 * B * (h_dim * d_in * h_dim + d_out * h_dim * d_out)  # 2 hi/lo passes
    bytes_accessed = B * (d_in * jnp.dtype(x.dtype).itemsize
                          + h_dim * d_in * w_itemsize
                          + h_dim * jnp.dtype(b1.dtype).itemsize
                          + d_out * h_dim * w_itemsize
                          + d_out * jnp.dtype(b2.dtype).itemsize
                          + d_out * jnp.dtype(out_dtype).itemsize)

    out = pl.pallas_call(
        _per_example_mlp_kernel,
        out_shape=jax.ShapeDtypeStruct((B, d_out), out_dtype),
        grid=grid,
        in_specs=[
            pl.BlockSpec((tb, d_in), lambda i: (i, 0)),
            pl.BlockSpec((tb, h_dim * d_in), lambda i: (i, 0)),
            pl.BlockSpec((tb, h_dim), lambda i: (i, 0)),
            pl.BlockSpec((tb, d_out * h_dim), lambda i: (i, 0)),
            pl.BlockSpec((tb, d_out), lambda i: (i, 0)),
        ],
        out_specs=pl.BlockSpec((tb, d_out), lambda i: (i, 0)),
        compiler_params=pltpu.CompilerParams(
            dimension_semantics=("parallel",),
            vmem_limit_bytes=vmem_limit),
        cost_estimate=pl.CostEstimate(
            flops=int(mul_flops + mxu_flops),
            transcendentals=0,
            bytes_accessed=int(bytes_accessed)),
    )(x, w1f, b1, w2f, b2)

    # TODO(synk): if d_out << 128 and output stores ever show up in profiles,
    # fold F=128//d_out examples per output row for fully lane-dense stores
    # (output bytes are <1% of traffic here, so it is skipped).
    return out


def _reference(x, w1, b1, w2, b2):
    # Direct transcription of the PyTorch forward (stack * unsqueeze, sum(-1)).
    h = jnp.sum(w1 * x[:, None, :], axis=-1) + b1
    h = jnp.maximum(h, 0.0)
    return jnp.sum(w2 * h[:, None, :], axis=-1) + b2


if __name__ == "__main__":
    # net = Sequential(Linear(D_IN, H), ReLU(), Linear(H, D_OUT))
    B, D_IN, H, D_OUT = 2, 16, 32, 8

    key = jax.random.PRNGKey(0)
    kx, k1, k2, k3, k4 = jax.random.split(key, 5)
    x = jax.random.normal(kx, (B, D_IN), jnp.float32)
    # per_example_params[b] = [W1_b, b1_b, W2_b, b2_b], passed stacked per-parameter.
    w1 = jax.random.normal(k1, (B, H, D_IN), jnp.float32) * 0.1
    b1 = jax.random.normal(k2, (B, H), jnp.float32) * 0.1
    w2 = jax.random.normal(k3, (B, D_OUT, H), jnp.float32) * 0.1
    b2 = jax.random.normal(k4, (B, D_OUT), jnp.float32) * 0.1

    y = per_example_params_net(x, w1, b1, w2, b2)
    y = jax.block_until_ready(y)

    y_ref = _reference(x, w1, b1, w2, b2)
    assert y.shape == (B, D_OUT)
    # Tolerance reflects the bf16 hi/lo split residual (~2^-18 relative),
    # far tighter than a single-pass bf16 matmul and ample for f32 semantics.
    np.testing.assert_allclose(np.asarray(y), np.asarray(y_ref),
                               rtol=1e-4, atol=1e-4)
    print("KERNEL_OK")
</pallas_src>

<mosaic_0001>
module attributes {stable_mosaic.version = 11 : i64} {
  func.func @_per_example_mlp_kernel(%arg0: i32, %arg1: memref<2x16xf32, #tpu.memory_space<vmem>>, %arg2: memref<2x512xf32, #tpu.memory_space<vmem>>, %arg3: memref<2x32xf32, #tpu.memory_space<vmem>>, %arg4: memref<2x256xf32, #tpu.memory_space<vmem>>, %arg5: memref<2x8xf32, #tpu.memory_space<vmem>>, %arg6: memref<2x8xf32, #tpu.memory_space<vmem>>) attributes {dimension_semantics = [#tpu.dimension_semantics<parallel>], iteration_bounds = array<i64: 1>, scalar_prefetch = 0 : i64, scratch_operands = 0 : i64, tpu.core_type = #tpu.core_type<tc>, window_params = [{transform_indices = @transform_0, window_bounds = array<i64: 2, 16>}, {transform_indices = @transform_1, window_bounds = array<i64: 2, 512>}, {transform_indices = @transform_2, window_bounds = array<i64: 2, 32>}, {transform_indices = @transform_3, window_bounds = array<i64: 2, 256>}, {transform_indices = @transform_4, window_bounds = array<i64: 2, 8>}, {transform_indices = @transform_5, window_bounds = array<i64: 2, 8>}]} {
    %c0 = arith.constant 0 : index
    %c0_0 = arith.constant 0 : index
    %0 = vector.load %arg1[%c0, %c0_0] : memref<2x16xf32, #tpu.memory_space<vmem>>, vector<2x16xf32>
    %c0_1 = arith.constant 0 : index
    %c0_2 = arith.constant 0 : index
    %1 = vector.load %arg2[%c0_1, %c0_2] : memref<2x512xf32, #tpu.memory_space<vmem>>, vector<2x512xf32>
    %c0_3 = arith.constant 0 : index
    %c0_4 = arith.constant 0 : index
    %2 = vector.load %arg3[%c0_3, %c0_4] : memref<2x32xf32, #tpu.memory_space<vmem>>, vector<2x32xf32>
    %c0_5 = arith.constant 0 : index
    %c0_6 = arith.constant 0 : index
    %3 = vector.load %arg4[%c0_5, %c0_6] : memref<2x256xf32, #tpu.memory_space<vmem>>, vector<2x256xf32>
    %c0_7 = arith.constant 0 : index
    %c0_8 = arith.constant 0 : index
    %4 = vector.load %arg5[%c0_7, %c0_8] : memref<2x8xf32, #tpu.memory_space<vmem>>, vector<2x8xf32>
    %5 = tpu.iota {dimensions = array<i32: 0>} : vector<512x32xi32>
    %6 = tpu.iota {dimensions = array<i32: 1>} : vector<512x32xi32>
    %c16_i32 = arith.constant 16 : i32
    %7 = vector.broadcast %c16_i32 : i32 to vector<512x32xi32>
    %8 = arith.muli %6, %7 : vector<512x32xi32>
    %9 = arith.cmpi sge, %5, %8 : vector<512x32xi32>
    %c16_i32_9 = arith.constant 16 : i32
    %10 = vector.broadcast %c16_i32_9 : i32 to vector<512x32xi32>
    %11 = arith.addi %8, %10 : vector<512x32xi32>
    %12 = arith.cmpi slt, %5, %11 : vector<512x32xi32>
    %13 = arith.andi %9, %12 : vector<512x32xi1>
    %cst = arith.constant 1.000000e+00 : f32
    %cst_10 = arith.constant 0.000000e+00 : f32
    %14 = vector.broadcast %cst : f32 to vector<512x32xf32>
    %15 = vector.broadcast %cst_10 : f32 to vector<512x32xf32>
    %16 = arith.select %13, %14, %15 : vector<512x32xi1>, vector<512x32xf32>
    %17 = arith.truncf %16 : vector<512x32xf32> to vector<512x32xbf16>
    %18 = tpu.iota {dimensions = array<i32: 0>} : vector<256x8xi32>
    %19 = tpu.iota {dimensions = array<i32: 1>} : vector<256x8xi32>
    %c32_i32 = arith.constant 32 : i32
    %20 = vector.broadcast %c32_i32 : i32 to vector<256x8xi32>
    %21 = arith.muli %19, %20 : vector<256x8xi32>
    %22 = arith.cmpi sge, %18, %21 : vector<256x8xi32>
    %c32_i32_11 = arith.constant 32 : i32
    %23 = vector.broadcast %c32_i32_11 : i32 to vector<256x8xi32>
    %24 = arith.addi %21, %23 : vector<256x8xi32>
    %25 = arith.cmpi slt, %18, %24 : vector<256x8xi32>
    %26 = arith.andi %22, %25 : vector<256x8xi1>
    %cst_12 = arith.constant 1.000000e+00 : f32
    %cst_13 = arith.constant 0.000000e+00 : f32
    %27 = vector.broadcast %cst_12 : f32 to vector<256x8xf32>
    %28 = vector.broadcast %cst_13 : f32 to vector<256x8xf32>
    %29 = arith.select %26, %27, %28 : vector<256x8xi1>, vector<256x8xf32>
    %30 = arith.truncf %29 : vector<256x8xf32> to vector<256x8xbf16>
    %31 = tpu.concatenate %0, %0, %0, %0, %0, %0, %0, %0, %0, %0, %0, %0, %0, %0, %0, %0, %0, %0, %0, %0, %0, %0, %0, %0, %0, %0, %0, %0, %0, %0, %0, %0 in 1 : vector<2x16xf32>, vector<2x16xf32>, vector<2x16xf32>, vector<2x16xf32>, vector<2x16xf32>, vector<2x16xf32>, vector<2x16xf32>, vector<2x16xf32>, vector<2x16xf32>, vector<2x16xf32>, vector<2x16xf32>, vector<2x16xf32>, vector<2x16xf32>, vector<2x16xf32>, vector<2x16xf32>, vector<2x16xf32>, vector<2x16xf32>, vector<2x16xf32>, vector<2x16xf32>, vector<2x16xf32>, vector<2x16xf32>, vector<2x16xf32>, vector<2x16xf32>, vector<2x16xf32>, vector<2x16xf32>, vector<2x16xf32>, vector<2x16xf32>, vector<2x16xf32>, vector<2x16xf32>, vector<2x16xf32>, vector<2x16xf32>, vector<2x16xf32> -> vector<2x512xf32>
    %32 = arith.mulf %1, %31 : vector<2x512xf32>
    %33 = arith.truncf %32 : vector<2x512xf32> to vector<2x512xbf16>
    %34 = arith.extf %33 : vector<2x512xbf16> to vector<2x512xf32>
    %35 = arith.subf %32, %34 : vector<2x512xf32>
    %36 = arith.truncf %35 : vector<2x512xf32> to vector<2x512xbf16>
    %cst_14 = arith.constant dense<0.000000e+00> : vector<2x32xf32>
    %37 = tpu.matmul %33, %17, %cst_14 {dimension_numbers = #tpu.dot_dimension_numbers<[1], [0], [0], [1], [0, 0, 1, 1], [], []>} : vector<2x512xbf16>, vector<512x32xbf16>, vector<2x32xf32> -> vector<2x32xf32>
    %cst_15 = arith.constant dense<0.000000e+00> : vector<2x32xf32>
    %38 = tpu.matmul %36, %17, %cst_15 {dimension_numbers = #tpu.dot_dimension_numbers<[1], [0], [0], [1], [0, 0, 1, 1], [], []>} : vector<2x512xbf16>, vector<512x32xbf16>, vector<2x32xf32> -> vector<2x32xf32>
    %39 = arith.addf %37, %38 : vector<2x32xf32>
    %40 = arith.addf %39, %2 : vector<2x32xf32>
    %cst_16 = arith.constant 0.000000e+00 : f32
    %41 = vector.broadcast %cst_16 : f32 to vector<2x32xf32>
    %42 = arith.maximumf %40, %41 : vector<2x32xf32>
    %43 = tpu.concatenate %42, %42, %42, %42, %42, %42, %42, %42 in 1 : vector<2x32xf32>, vector<2x32xf32>, vector<2x32xf32>, vector<2x32xf32>, vector<2x32xf32>, vector<2x32xf32>, vector<2x32xf32>, vector<2x32xf32> -> vector<2x256xf32>
    %44 = arith.mulf %3, %43 : vector<2x256xf32>
    %45 = arith.truncf %44 : vector<2x256xf32> to vector<2x256xbf16>
    %46 = arith.extf %45 : vector<2x256xbf16> to vector<2x256xf32>
    %47 = arith.subf %44, %46 : vector<2x256xf32>
    %48 = arith.truncf %47 : vector<2x256xf32> to vector<2x256xbf16>
    %cst_17 = arith.constant dense<0.000000e+00> : vector<2x8xf32>
    %49 = tpu.matmul %45, %30, %cst_17 {dimension_numbers = #tpu.dot_dimension_numbers<[1], [0], [0], [1], [0, 0, 1, 1], [], []>} : vector<2x256xbf16>, vector<256x8xbf16>, vector<2x8xf32> -> vector<2x8xf32>
    %cst_18 = arith.constant dense<0.000000e+00> : vector<2x8xf32>
    %50 = tpu.matmul %48, %30, %cst_18 {dimension_numbers = #tpu.dot_dimension_numbers<[1], [0], [0], [1], [0, 0, 1, 1], [], []>} : vector<2x256xbf16>, vector<256x8xbf16>, vector<2x8xf32> -> vector<2x8xf32>
    %51 = arith.addf %49, %50 : vector<2x8xf32>
    %52 = arith.addf %51, %4 : vector<2x8xf32>
    %c0_19 = arith.constant 0 : index
    %c0_20 = arith.constant 0 : index
    %53 = vector.load %arg6[%c0_19, %c0_20] : memref<2x8xf32, #tpu.memory_space<vmem>>, vector<2x8xf32>
    tpu.vector_store %arg6[%c0_19, %c0_20], %52 {strides = array<i32>} : memref<2x8xf32, #tpu.memory_space<vmem>>, vector<2x8xf32>,
    return
  }
  func.func @transform_0(%arg0: i32) -> (i32, i32) {
    %c0_i32 = arith.constant 0 : i32
    %c0_i32_0 = arith.constant 0 : i32
    return %arg0, %c0_i32 : i32, i32
  }
  func.func @transform_1(%arg0: i32) -> (i32, i32) {
    %c0_i32 = arith.constant 0 : i32
    %c0_i32_0 = arith.constant 0 : i32
    return %arg0, %c0_i32 : i32, i32
  }
  func.func @transform_2(%arg0: i32) -> (i32, i32) {
    %c0_i32 = arith.constant 0 : i32
    %c0_i32_0 = arith.constant 0 : i32
    return %arg0, %c0_i32 : i32, i32
  }
  func.func @transform_3(%arg0: i32) -> (i32, i32) {
    %c0_i32 = arith.constant 0 : i32
    %c0_i32_0 = arith.constant 0 : i32
    return %arg0, %c0_i32 : i32, i32
  }
  func.func @transform_4(%arg0: i32) -> (i32, i32) {
    %c0_i32 = arith.constant 0 : i32
    %c0_i32_0 = arith.constant 0 : i32
    return %arg0, %c0_i32 : i32, i32
  }
  func.func @transform_5(%arg0: i32) -> (i32, i32) {
    %c0_i32 = arith.constant 0 : i32
    %c0_i32_0 = arith.constant 0 : i32
    return %arg0, %c0_i32 : i32, i32
  }
}

</mosaic_0001>

<bundles_post_ra>
// kernel: tpu_custom_call.1
= control target key start
LH: loop header
LB: loop body
LE: loop exit
PB: predicated region body
PF: predicated region fallthrough
CT: control target
= control target key end

     0   :  { %10 = vsyncpa [#allocation3], 0  ;;  %s2662_s0 = inlined_call_operand.hbm [shape: f32[2,16], index: 0, kind: input, shape index: {}]   ;;  %s2663_s1 = inlined_call_operand.hbm [shape: f32[2,512], index: 1, kind: input, shape index: {}]   ;;  %s2664_s2 = inlined_call_operand.hbm [shape: f32[2,32], index: 2, kind: input, shape index: {}]   ;;  %s2665_s3 = inlined_call_operand.hbm [shape: f32[2,256], index: 3, kind: input, shape index: {}]   ;;  %s2666_s4 = inlined_call_operand.vmem [shape: f32[2,8], index: 4, kind: input, shape index: {}]   ;;  %s2667_s5 = inlined_call_operand.hbm [shape: f32[2,8], index: 5, kind: output, shape index: {}]  }
   0x1   :  { %11 = vsyncpa [#allocation6], 0 }
   0x2   :  { %12 = vsyncpa [#allocation9], 0  ;;  %s30_s20 = sshll.u32 %s2663_s1, 4  ;;  %s31_s20 = int_to_ptr.hbm [resolvable:$true] %s30_s20 }
   0x3   :  { %13 = vsyncpa [#allocation4], 0  ;;  %s1249_s21 = smov [#allocation5]   ;;  %s19_s25 = sshll.u32 %s2662_s0, 4  ;;  %s20_s25 = int_to_ptr.hbm [resolvable:$true] %s19_s25 }
   0x4   :  { %s32_s22 = sshll.u32 %s1249_s21, 4  ;;  %s1250_s26 = smov [#allocation2]   ;;  %s33_s22 = int_to_ptr.vmem [resolvable:$true] %s32_s22 }
   0x5   :  { %35 = dma.hbm_to_vmem [thread:$0]  %s31_s20, 128, %s33_s22, [#allocation6]  }
   0x6   :  { %s21_s27 = sshll.u32 %s1250_s26, 4  ;;  %s41_s30 = sshll.u32 %s2664_s2, 4  ;;  %s22_s27 = int_to_ptr.vmem [resolvable:$true] %s21_s27  ;;  %s42_s30 = int_to_ptr.hbm [resolvable:$true] %s41_s30 }
   0x7   :  { %24 = dma.hbm_to_vmem [thread:$0]  %s20_s25, 32, %s22_s27, [#allocation3]  }
   0x8   :  { %s52_s7 = sshll.u32 %s2665_s3, 4  ;;  %s1251_s8 = smov [#allocation7]   ;;  %s53_s7 = int_to_ptr.hbm [resolvable:$true] %s52_s7 }
   0x9   :  { %s43_s9 = sshll.u32 %s1251_s8, 4  ;;  %s1252_s0 = smov [#allocation8]   ;;  %s44_s9 = int_to_ptr.vmem [resolvable:$true] %s43_s9 }
   0xa   :  { %46 = dma.hbm_to_vmem [thread:$0]  %s42_s30, 32, %s44_s9, [#allocation6]  }
   0xb   :  { %s54_s10 = sshll.u32 %s1252_s0, 4  ;;  %s55_s10 = int_to_ptr.vmem [resolvable:$true] %s54_s10 }
   0xc   :  { %57 = dma.hbm_to_vmem [thread:$0]  %s53_s7, 64, %s55_s10, [#allocation9]  }
   0xd   :  { %1241 = dma.done.wait [#allocation3], 32  }
   0xe   :  { %1242 = vsyncadd [#allocation3], 4294967264 }
   0xf   :  { %1243 = dma.done.wait [#allocation6], 160  }
  0x10   :  { %1244 = vsyncadd [#allocation6], 4294967136 }
  0x11   :  { %1245 = dma.done.wait [#allocation9], 64  }
  0x12   :  { %1246 = vsyncadd [#allocation9], 4294967232  ;;  %v1304_v0 = vld [vmem:[#allocation2] sm:$0x3]  ;;  %s1253_s2 = smov 16   ;;  %s1254_s3 = smov 48   ;;  %v81_v1 = vlaneseq }
  0x13   :  { %585 = vrot.lane.b32.xlu0 %v1304_v0, %s1253_s2  ;;  %591 = vrot.lane.b32.xlu1 %v1304_v0, %s1254_s3  ;;  %s1255_s11 = smov 80   ;;  %s1256_s12 = smov 32   ;;  %v2710_v15 = vmov 1.0|1.0   ;;  %v2838_v16 = vmov 0  ;;  %v2843_v20 = vmov 0 }
  0x14   :  { %597 = vrot.lane.b32.xlu2 %v1304_v0, %s1255_s11  ;;  %s1257_s13 = smov 64   ;;  %s1258_s14 = smov 96   ;;  %v1316_v2 = vand.u32 127, %v81_v1  ;;  %v1318_v3 = vshrl.u32 %v81_v1, 7  ;;  %v2846_v22 = vmov 0  ;;  %v2849_v24 = vmov 0 }
  0x15   :  { %s1259_s15 = smov 112   ;;  %v2852_v26 = vmov 0  ;;  %v2854_v28 = vmov 0  ;;  %v2856_v30 = vmov 0  ;;  %v2858_v32 = vmov 0  ;;  %s1261_s18 = smov [#allocation10]  }
  0x16   :  { %2829 = vst [vmem:[#allocation15_spill] sm:$0xff] %v1316_v2  ;;  %v1321_v4 = vmul.u32 16, %v1316_v2  ;;  %v1324_v5 = vadd.s32 112, %v1318_v3  ;;  %v1327_v6 = vadd.s32 120, %v1318_v3  ;;  %v1333_v8 = vadd.s32 240, %v1318_v3  ;;  %s902_s19 = sshll.u32 %s1261_s18, 4  ;;  %s903_s19 = int_to_ptr.vmem [resolvable:$true] %s902_s19 }
  0x17   :  { %v1336_v9 = vadd.s32 248, %v1318_v3  ;;  %v128_v10 = vadd.s32 368, %v1318_v3  ;;  %v129_v12 = vadd.s32 376, %v1318_v3  ;;  %v144_v14 = vadd.s32 496, %v1318_v3  ;;  %s904_s22 = sshll.u32 %s2667_s5, 4  ;;  %s905_s22 = int_to_ptr.hbm [resolvable:$true] %s904_s22 }
  0x18   :  { %2830 = vst [vmem:[#allocation16_spill] sm:$0xff] %v1324_v5  ;;  %v1330_v7 = vadd.s32 16, %v1321_v4  ;;  %vm163_vm0 = vcmp.ge.s32.totalorder %v1324_v5, %v1321_v4  ;;  %vm164_vm1 = vcmp.ge.s32.totalorder %v1327_v6, %v1321_v4  ;;  %vm179_vm5 = vcmp.ge.s32.totalorder %v1333_v8, %v1321_v4 }
  0x19   :  { %2831 = vst [vmem:[#allocation17_spill] sm:$0xff] %v1327_v6  ;;  %vm180_vm8 = vcmp.ge.s32.totalorder %v1336_v9, %v1321_v4  ;;  %vm195_vm12 = vcmp.ge.s32.totalorder %v128_v10, %v1321_v4  ;;  %v145_v17 = vadd.s32 504, %v1318_v3  ;;  %vm196_vm15 = vcmp.ge.s32.totalorder %v129_v12, %v1321_v4 }
  0x1a   :  { %2832 = vst [vmem:[#allocation18_spill] sm:$0xff] %v1333_v8  ;;  %vm228_vm2 = vcmp.lt.s32.totalorder %v1324_v5, %v1330_v7  ;;  %vm229_vm3 = vcmp.lt.s32.totalorder %v1327_v6, %v1330_v7  ;;  %vm244_vm6 = vcmp.lt.s32.totalorder %v1333_v8, %v1330_v7  ;;  %vm245_vm9 = vcmp.lt.s32.totalorder %v1336_v9, %v1330_v7 }
  0x1b   :  { %588 = vrot.lane.b32.xlu0 %v1304_v0, %s1256_s12  ;;  %594 = vrot.lane.b32.xlu1 %v1304_v0, %s1257_s13  ;;  %2833 = vst [vmem:[#allocation19_spill] sm:$0xff] %v1336_v9  ;;  %vm1347_vm4 = vmand %vm163_vm0, %vm228_vm2  ;;  %vm260_vm13 = vcmp.lt.s32.totalorder %v128_v10, %v1330_v7  ;;  %vm261_vm0 = vcmp.lt.s32.totalorder %v129_v12, %v1330_v7  ;;  %v1393_v19 = vadd.s32 96, %v1318_v3  ;;  %v1408_v21 = vadd.s32 104, %v1318_v3 }
  0x1c   :  { %600 = vrot.lane.b32.xlu2 %v1304_v0, %s1258_s14  ;;  %vm1356_vm7 = vmand %vm164_vm1, %vm229_vm3  ;;  %vm211_vm3 = vcmp.ge.s32.totalorder %v144_v14, %v1321_v4  ;;  %v1421_v23 = vadd.s32 224, %v1318_v3  ;;  %v1438_v25 = vadd.s32 232, %v1318_v3  ;;  %v126_v27 = vadd.s32 352, %v1318_v3 }
  0x1d   :  { %vm2670_vm10 = vmpackc.low %vm1356_vm7, %vm1347_vm4  ;;  %2842 = vst [vmem:[#allocation20_spill] sm:$0xff] %v1393_v19  ;;  %v127_v29 = vadd.s32 360, %v1318_v3  ;;  %v142_v31 = vadd.s32 480, %v1318_v3  ;;  %v143_v33 = vadd.s32 488, %v1318_v3  ;;  %v2860_v34 = vmov 0 }
  0x1e   :  { %917 = vmatpush.bf16.msk.msra.mxu0 %vm2670_vm10, %v2710_v15  ;;  %vm1375_vm11 = vmand %vm179_vm5, %vm244_vm6  ;;  %vm276_vm5 = vcmp.lt.s32.totalorder %v144_v14, %v1330_v7  ;;  %2845 = vst [vmem:[#allocation21_spill] sm:$0xff] %v1408_v21  ;;  %vm242_vm10 = vcmp.lt.s32.totalorder %v1421_v23, %v1330_v7  ;;  %v1505_v35 = vadd.s32 80, %v1318_v3  ;;  %v2863_v36 = vmov 0 }
  0x1f   :  { %v2839_v16 = vsel %vm1375_vm11, 4294967295, %v2838_v16  ;;  %vm1382_vm14 = vmand %vm180_vm8, %vm245_vm9  ;;  %vm212_vm8 = vcmp.ge.s32.totalorder %v145_v17, %v1321_v4  ;;  %vm277_vm9 = vcmp.lt.s32.totalorder %v145_v17, %v1330_v7  ;;  %2848 = vst [vmem:[#allocation22_spill] sm:$0xff] %v1421_v23  ;;  %v1520_v37 = vadd.s32 88, %v1318_v3 }
  0x20   :  { %vm2668_vm1 = vmpackc.low %vm1382_vm14, %vm1375_vm11  ;;  %2851 = vst [vmem:[#allocation23_spill] sm:$0xff] %v1438_v25  ;;  %vm259_vm11 = vcmp.lt.s32.totalorder %v127_v29, %v1330_v7  ;;  %v2866_v38 = vmov 0  ;;  %v1533_v39 = vadd.s32 208, %v1318_v3  ;;  %v2869_v40 = vmov 0 }
  0x21   :  { %933 = vmatpush.bf16.msk.msra.mxu1 %vm2668_vm1, %v2710_v15  ;;  %vm1401_vm2 = vmand %vm195_vm12, %vm260_vm13  ;;  %2862 = vst [vmem:[#allocation24_spill] sm:$0xff] %v1505_v35  ;;  %v1550_v41 = vadd.s32 216, %v1318_v3  ;;  %v2872_v42 = vmov 0  ;;  %v124_v43 = vadd.s32 336, %v1318_v3  ;;  %v2874_v44 = vmov 0 }
  0x22   :  { %v2844_v20 = vsel %vm1401_vm2, 4294967295, %v2843_v20  ;;  %vm1410_vm6 = vmand %vm196_vm15, %vm261_vm0  ;;  %vm161_vm15 = vcmp.ge.s32.totalorder %v1393_v19, %v1321_v4  ;;  %vm226_vm0 = vcmp.lt.s32.totalorder %v1393_v19, %v1330_v7  ;;  %2865 = vst [vmem:[#allocation25_spill] sm:$0xff] %v1520_v37  ;;  %v125_v45 = vadd.s32 344, %v1318_v3 }
  0x23   :  { %603 = vrot.lane.b32.xlu0 %v1304_v0, %s1259_s15  ;;  %v2847_v22 = vsel %vm1410_vm6, 4294967295, %v2846_v22  ;;  %vm2669_vm12 = vmpackc.low %vm1410_vm6, %vm1401_vm2  ;;  %vm194_vm6 = vcmp.ge.s32.totalorder %v127_v29, %v1321_v4  ;;  %2868 = vst [vmem:[#allocation26_spill] sm:$0xff] %v1533_v39  ;;  %v2876_v46 = vmov 0  ;;  %v140_v49 = vadd.s32 464, %v1318_v3 }
  0x24   :  { %949 = vmatpush.bf16.msk.msra.mxu2 %vm2669_vm12, %v2710_v15  ;;  %vm1429_vm13 = vmand %vm211_vm3, %vm276_vm5  ;;  %vm162_vm12 = vcmp.ge.s32.totalorder %v1408_v21, %v1321_v4  ;;  %vm227_vm3 = vcmp.lt.s32.totalorder %v1408_v21, %v1330_v7  ;;  %2871 = vst [vmem:[#allocation27_spill] sm:$0xff] %v1550_v41  ;;  %v2878_v50 = vmov 0  ;;  %v141_v51 = vadd.s32 472, %v1318_v3 }
  0x25   :  { %v2850_v24 = vsel %vm1429_vm13, 4294967295, %v2849_v24  ;;  %vm1440_vm1 = vmand %vm212_vm8, %vm277_vm9  ;;  %vm177_vm9 = vcmp.ge.s32.totalorder %v1421_v23, %v1321_v4  ;;  %v2880_v52 = vmov 0  ;;  %v1617_v54 = vadd.s32 64, %v1318_v3 }
  0x26   :  { %v2853_v26 = vsel %vm1440_vm1, 4294967295, %v2852_v26  ;;  %vm2673_vm5 = vmpackc.low %vm1440_vm1, %vm1429_vm13  ;;  %vm178_vm13 = vcmp.ge.s32.totalorder %v1438_v25, %v1321_v4  ;;  %v2883_v55 = vmov 0  ;;  %v1632_v56 = vadd.s32 72, %v1318_v3 }
  0x27   :  { %965 = vmatpush.bf16.msk.msra.mxu3 %vm2673_vm5, %v2710_v15  ;;  %vm1459_vm8 = vmand %vm161_vm15, %vm226_vm0  ;;  %vm243_vm15 = vcmp.lt.s32.totalorder %v1438_v25, %v1330_v7  ;;  %vm258_vm5 = vcmp.lt.s32.totalorder %v126_v27, %v1330_v7  ;;  %2882 = vst [vmem:[#allocation28_spill] sm:$0xff] %v1617_v54  ;;  %v2886_v57 = vmov 0  ;;  %v1645_v58 = vadd.s32 192, %v1318_v3 }
  0x28   :  { %v2855_v28 = vsel %vm1459_vm8, 4294967295, %v2854_v28  ;;  %vm1468_vm2 = vmand %vm162_vm12, %vm227_vm3  ;;  %vm193_vm3 = vcmp.ge.s32.totalorder %v126_v27, %v1321_v4  ;;  %2885 = vst [vmem:[#allocation29_spill] sm:$0xff] %v1632_v56  ;;  %v2889_v59 = vmov 0  ;;  %v1662_v60 = vadd.s32 200, %v1318_v3 }
  0x29   :  { %v2857_v30 = vsel %vm1468_vm2, 4294967295, %v2856_v30  ;;  %vm2677_vm0 = vmpackc.low %vm1468_vm2, %vm1459_vm8  ;;  %vm210_vm8 = vcmp.ge.s32.totalorder %v143_v33, %v1321_v4  ;;  %vm257_vm2 = vcmp.lt.s32.totalorder %v125_v45, %v1330_v7  ;;  %2888 = vst [vmem:[#allocation30_spill] sm:$0xff] %v1645_v58  ;;  %v2892_v1 = vmov 0 }
  0x2a   :  { %919 = vmatpush.bf16.msk.msra.mxu0 %vm2677_vm0, %v2710_v15  ;;  %vm1487_vm12 = vmand %vm177_vm9, %vm242_vm10  ;;  %vm209_vm9 = vcmp.ge.s32.totalorder %v142_v31, %v1321_v4  ;;  %2891 = vst [vmem:[#allocation31_spill] sm:$0xff] %v1662_v60  ;;  %v2898_v14 = vmov 0  ;;  %v123_v17 = vadd.s32 328, %v1318_v3  ;;  %v2901_v29 = vmov 0 }
  0x2b   :  { %v2859_v32 = vsel %vm1487_vm12, 4294967295, %v2858_v32  ;;  %vm1494_vm1 = vmand %vm178_vm13, %vm243_vm15  ;;  %vm274_vm15 = vcmp.lt.s32.totalorder %v142_v31, %v1330_v7  ;;  %v138_v31 = vadd.s32 448, %v1318_v3  ;;  %v2944_v25 = vmov 0  ;;  %v3121_v13 = vld [vmem:[#allocation27_spill] sm:$0xff] }
  0x2c   :  { %v2861_v34 = vsel %vm1494_vm1, 4294967295, %v2860_v34  ;;  %vm2680_vm10 = vmpackc.low %vm1494_vm1, %vm1487_vm12  ;;  %vm275_vm12 = vcmp.lt.s32.totalorder %v143_v33, %v1330_v7  ;;  %vm192_vm1 = vcmp.ge.s32.totalorder %v125_v45, %v1321_v4  ;;  %v2904_v45 = vmov 0 }
  0x2d   :  { %935 = vmatpush.bf16.msk.msra.mxu1 %vm2680_vm10, %v2710_v15  ;;  %vm1513_vm13 = vmand %vm193_vm3, %vm258_vm5  ;;  %vm224_vm3 = vcmp.lt.s32.totalorder %v1505_v35, %v1330_v7  ;;  %v134_v19 = vadd.s32 416, %v1318_v3  ;;  %v1998_v6 = vadd.s32 16, %v1318_v3  ;;  %v2987_v5 = vmov 0 }
  0x2e   :  { %v2864_v36 = vsel %vm1513_vm13, 4294967295, %v2863_v36  ;;  %vm1522_vm0 = vmand %vm194_vm6, %vm259_vm11  ;;  %vm159_vm6 = vcmp.ge.s32.totalorder %v1505_v35, %v1321_v4  ;;  %v2139_v2 = vadd.s32 128, %v1318_v3 }
  0x2f   :  { %v2867_v38 = vsel %vm1522_vm0, 4294967295, %v2866_v38  ;;  %vm2681_vm5 = vmpackc.low %vm1522_vm0, %vm1513_vm13  ;;  %vm240_vm13 = vcmp.lt.s32.totalorder %v1533_v39, %v1330_v7  ;;  %2958 = vst [vmem:[#allocation41_spill] sm:$0xff] %v1998_v6 }
  0x30   :  { %951 = vmatpush.bf16.msk.msra.mxu2 %vm2681_vm5, %v2710_v15  ;;  %vm1541_vm11 = vmand %vm209_vm9, %vm274_vm15  ;;  %vm160_vm5 = vcmp.ge.s32.totalorder %v1520_v37, %v1321_v4  ;;  %vm225_vm9 = vcmp.lt.s32.totalorder %v1520_v37, %v1330_v7  ;;  %2990 = vst [vmem:[#allocation51_spill] sm:$0xff] %v2139_v2 }
  0x31   :  { %v2870_v40 = vsel %vm1541_vm11, 4294967295, %v2869_v40  ;;  %vm1552_vm10 = vmand %vm210_vm8, %vm275_vm12  ;;  %vm175_vm12 = vcmp.ge.s32.totalorder %v1533_v39, %v1321_v4 }
  0x32   :  { %v2873_v42 = vsel %vm1552_vm10, 4294967295, %v2872_v42  ;;  %vm2685_vm15 = vmpackc.low %vm1552_vm10, %vm1541_vm11  ;;  %vm176_vm11 = vcmp.ge.s32.totalorder %v1550_v41, %v1321_v4 }
  0x33   :  { %967 = vmatpush.bf16.msk.msra.mxu3 %vm2685_vm15, %v2710_v15  ;;  %vm1571_vm8 = vmand %vm159_vm6, %vm224_vm3  ;;  %vm241_vm6 = vcmp.lt.s32.totalorder %v1550_v41, %v1330_v7  ;;  %vm256_vm15 = vcmp.lt.s32.totalorder %v124_v43, %v1330_v7  ;;  %v2942_v41 = vmov 0 }
  0x34   :  { %v2875_v44 = vsel %vm1571_vm8, 4294967295, %v2874_v44  ;;  %vm1580_vm0 = vmand %vm160_vm5, %vm225_vm9  ;;  %vm191_vm9 = vcmp.ge.s32.totalorder %v124_v43, %v1321_v4 }
  0x35   :  { %v2877_v46 = vsel %vm1580_vm0, 4294967295, %v2876_v46  ;;  %vm2689_vm3 = vmpackc.low %vm1580_vm0, %vm1571_vm8  ;;  %vm208_vm0 = vcmp.ge.s32.totalorder %v141_v51, %v1321_v4 }
  0x36   :  { %921 = vmatpush.bf16.msk.msra.mxu0 %vm2689_vm3, %v2710_v15  ;;  %vm1599_vm5 = vmand %vm175_vm12, %vm240_vm13  ;;  %vm207_vm12 = vcmp.ge.s32.totalorder %v140_v49, %v1321_v4  ;;  %vm606_vm3 = vcmask 130048  }
  0x37   :  { %v2879_v50 = vsel %vm1599_vm5, 4294967295, %v2878_v50  ;;  %vm1606_vm10 = vmand %vm176_vm11, %vm241_vm6  ;;  %vm272_vm6 = vcmp.lt.s32.totalorder %v140_v49, %v1330_v7  ;;  %v1742_v49 = vadd.s32 48, %v1318_v3 }
  0x38   :  { %v2881_v52 = vsel %vm1606_vm10, 4294967295, %v2880_v52  ;;  %vm2692_vm13 = vmpackc.low %vm1606_vm10, %vm1599_vm5  ;;  %vm238_vm5 = vcmp.lt.s32.totalorder %v1645_v58, %v1330_v7 }
  0x39   :  { %937 = vmatpush.bf16.msk.msra.mxu1 %vm2692_vm13, %v2710_v15  ;;  %vm1625_vm11 = vmand %vm191_vm9, %vm256_vm15  ;;  %vm273_vm13 = vcmp.lt.s32.totalorder %v141_v51, %v1330_v7  ;;  %2908 = vst [vmem:[#allocation32_spill] sm:$0xff] %v1742_v49 }
  0x3a   :  { %v2884_v55 = vsel %vm1625_vm11, 4294967295, %v2883_v55  ;;  %vm1634_vm8 = vmand %vm192_vm1, %vm257_vm2  ;;  %vm2894_vm2 = vcmask 261120  }
  0x3b   :  { %v2887_v57 = vsel %vm1634_vm8, 4294967295, %v2886_v57  ;;  %vm2694_vm9 = vmpackc.low %vm1634_vm8, %vm1625_vm11  ;;  %vm618_vm8 = vcmask 916480  }
  0x3c   :  { %953 = vmatpush.bf16.msk.msra.mxu2 %vm2694_vm9, %v2710_v15  ;;  %vm1653_vm1 = vmand %vm207_vm12, %vm272_vm6  ;;  %vm158_vm6 = vcmp.ge.s32.totalorder %v1632_v56, %v1321_v4  ;;  %vm223_vm9 = vcmp.lt.s32.totalorder %v1632_v56, %v1330_v7 }
  0x3d   :  { %v2890_v59 = vsel %vm1653_vm1, 4294967295, %v2889_v59  ;;  %vm1667_vm12 = vmand %vm208_vm0, %vm273_vm13  ;;  %vm2895_vm0 = vcmask 392192   ;;  %vm2896_vm13 = vcmp.lt.s32.totalorder %v1617_v54, %v1330_v7 }
  0x3e   :  { %v2893_v1 = vsel %vm1667_vm12, 4294967295, %v2892_v1 }
  0x6e   :  { %v598_v53 = vpop.permute.xlu2 %597 }
  0x76   :  { %v601_v33 = vpop.permute.xlu2 %600 }
  0x85   :  { %v586_v47 = vpop.permute.xlu0 %585  ;;  %v592_v48 = vpop.permute.xlu1 %591 }
  0x86   :  { %v607_v61 = vsel %vm606_vm3, %v1304_v0, %v586_v47  ;;  %vm2696_vm3 = vmpackc.low %vm1667_vm12, %vm1653_vm1  ;;  %v122_v0 = vadd.s32 320, %v1318_v3  ;;  %vm2900_vm1 = vcmask 523264   ;;  %v139_v47 = vadd.s32 456, %v1318_v3 }
  0x87   :  { %969 = vmatpush.bf16.msk.msra.mxu3 %vm2696_vm3, %v2710_v15  ;;  %vm1704_vm3 = vmand %vm158_vm6, %vm223_vm9 }
  0x88   :  { %v2902_v29 = vsel %vm1704_vm3, 4294967295, %v2901_v29  ;;  %vm189_vm6 = vcmp.ge.s32.totalorder %v122_v0, %v1321_v4  ;;  %vm254_vm12 = vcmp.lt.s32.totalorder %v122_v0, %v1330_v7 }
  0x8d   :  { %v589_v62 = vpop.permute.xlu0 %588  ;;  %v595_v63 = vpop.permute.xlu1 %594 }
  0x8e   :  { %v609_v10 = vsel %vm2894_vm2, %v607_v61, %v589_v62  ;;  %vm2897_vm2 = vcmp.ge.s32.totalorder %v1617_v54, %v1321_v4  ;;  %v2910_v61 = vmov 0  ;;  %v1758_v62 = vadd.s32 56, %v1318_v3 }
  0x8f   :  { %v611_v12 = vsel %vm2895_vm0, %v609_v10, %v592_v48  ;;  %vm1694_vm15 = vmand %vm2897_vm2, %vm2896_vm13  ;;  %vm173_vm0 = vcmp.ge.s32.totalorder %v1645_v58, %v1321_v4  ;;  %vm174_vm13 = vcmp.ge.s32.totalorder %v1662_v60, %v1321_v4  ;;  %vm239_vm2 = vcmp.lt.s32.totalorder %v1662_v60, %v1330_v7 }
  0x90   :  { %v2899_v14 = vsel %vm1694_vm15, 4294967295, %v2898_v14  ;;  %v613_v27 = vsel %vm2900_vm1, %v611_v12, %v595_v63  ;;  %vm2702_vm11 = vmpackc.low %vm1704_vm3, %vm1694_vm15  ;;  %vm2903_vm1 = vcmask 654336   ;;  %v2906_v48 = vmov 0  ;;  %2912 = vst [vmem:[#allocation33_spill] sm:$0xff] %v1758_v62 }
  0x91   :  { %v615_v43 = vsel %vm2903_vm1, %v613_v27, %v598_v53  ;;  %923 = vmatpush.bf16.msk.msra.mxu0 %vm2702_vm11, %v2710_v15  ;;  %vm1724_vm9 = vmand %vm173_vm0, %vm238_vm5  ;;  %vm190_vm1 = vcmp.ge.s32.totalorder %v123_v17, %v1321_v4  ;;  %vm255_vm15 = vcmp.lt.s32.totalorder %v123_v17, %v1330_v7  ;;  %vm2909_vm3 = vcmask 785408   ;;  %v77_v17 = vld [vmem:[#allocation5] sm:$0xff] }
  0x92   :  { %v2905_v45 = vsel %vm1724_vm9, 4294967295, %v2904_v45  ;;  %vm1731_vm10 = vmand %vm174_vm13, %vm239_vm2  ;;  %v617_v51 = vsel %vm2909_vm3, %v615_v43, %v601_v33  ;;  %vm205_vm2 = vcmp.ge.s32.totalorder %v138_v31, %v1321_v4  ;;  %vm270_vm5 = vcmp.lt.s32.totalorder %v138_v31, %v1330_v7 }
  0x93   :  { %v2907_v48 = vsel %vm1731_vm10, 4294967295, %v2906_v48  ;;  %vm2704_vm0 = vmpackc.low %vm1731_vm10, %vm1724_vm9  ;;  %v2913_v10 = vmov 0  ;;  %v1774_v33 = vadd.s32 176, %v1318_v3  ;;  %v2916_v43 = vmov 0 }
  0x94   :  { %939 = vmatpush.bf16.msk.msra.mxu1 %vm2704_vm0, %v2710_v15  ;;  %vm1751_vm13 = vmand %vm189_vm6, %vm254_vm12  ;;  %vm271_vm6 = vcmp.lt.s32.totalorder %v139_v47, %v1330_v7  ;;  %vm2919_vm3 = vcmask 1041408   ;;  %vm2920_vm12 = vcmask 1045508   ;;  %v2922_v31 = vmov 0 }
  0x95   :  { %v604_v53 = vpop.permute.xlu0 %603  ;;  %v2911_v61 = vsel %vm1751_vm13, 4294967295, %v2910_v61  ;;  %vm1763_vm11 = vmand %vm190_vm1, %vm255_vm15  ;;  %2915 = vst [vmem:[#allocation34_spill] sm:$0xff] %v1774_v33  ;;  %vm155_vm15 = vcmp.ge.s32.totalorder %v1742_v49, %v1321_v4  ;;  %vm220_vm1 = vcmp.lt.s32.totalorder %v1742_v49, %v1330_v7  ;;  %v1896_v49 = vadd.s32 160, %v1318_v3 }
  0x96   :  { %v619_v63 = vsel %vm618_vm8, %v617_v51, %v604_v53  ;;  %v2914_v10 = vsel %vm1763_vm11, 4294967295, %v2913_v10  ;;  %vm2707_vm0 = vmpackc.low %vm1763_vm11, %vm1751_vm13  ;;  %v1793_v51 = vadd.s32 184, %v1318_v3  ;;  %vm2924_vm11 = vcmask 1043456  }
  0x97   :  { %v621_v0 = vrot.slane %v619_v63, 6  ;;  %v622_v12 = vrot.slane %v619_v63, 4  ;;  %v623_v27 = vrot.slane %v619_v63, 2  ;;  %955 = vmatpush.bf16.msk.msra.mxu2 %vm2707_vm0, %v2710_v15  ;;  %vm1784_vm8 = vmand %vm205_vm2, %vm270_vm5  ;;  %vm2921_vm0 = vcmp.ge.s32.totalorder %v139_v47, %v1321_v4  ;;  %2940 = vst [vmem:[#allocation38_spill] sm:$0xff] %v1896_v49 }
  0x98   :  { %v2917_v43 = vsel %vm1784_vm8, 4294967295, %v2916_v43  ;;  %2918 = vst [vmem:[#allocation35_spill] sm:$0xff] %v1793_v51  ;;  %vm1799_vm13 = vmand %vm2921_vm0, %vm271_vm6  ;;  %vm156_vm5 = vcmp.ge.s32.totalorder %v1758_v62, %v1321_v4  ;;  %vm221_vm2 = vcmp.lt.s32.totalorder %v1758_v62, %v1330_v7  ;;  %v2938_v62 = vmov 0 }
  0x99   :  { %v625_v53 = vsel %vm2919_vm3, %v619_v63, %v621_v0  ;;  %v627_v60 = vsel %vm2920_vm12, %v622_v12, %v623_v27  ;;  %v2923_v31 = vsel %vm1799_vm13, 4294967295, %v2922_v31  ;;  %vm2713_vm3 = vmpackc.low %vm1799_vm13, %vm1784_vm8  ;;  %v120_v63 = vadd.s32 304, %v1318_v3 }
  0x9a   :  { %v629_v15 = vsel %vm2924_vm11, %v625_v53, %v627_v60  ;;  %v2925_v0 = vmov 1.0|1.0   ;;  %vm1821_vm0 = vmand %vm155_vm15, %vm220_vm1  ;;  %v2926_v12 = vmov 0  ;;  %vm171_vm11 = vcmp.ge.s32.totalorder %v1774_v33, %v1321_v4 }
  0x9b   :  { %v1813_v47 = vmul.f32 %v629_v15, %v77_v17  ;;  %971 = vmatpush.bf16.msk.msra.mxu3 %vm2713_vm3, %v2925_v0  ;;  %v2927_v12 = vsel %vm1821_vm0, 4294967295, %v2926_v12  ;;  %vm236_vm12 = vcmp.lt.s32.totalorder %v1774_v33, %v1330_v7  ;;  %v121_v15 = vadd.s32 312, %v1318_v3  ;;  %vm1830_vm6 = vmand %vm156_vm5, %vm221_vm2 }
  0x9c   :  { %v2928_v60 = vmov 0  ;;  %vm172_vm8 = vcmp.ge.s32.totalorder %v1793_v51, %v1321_v4  ;;  %vm237_vm15 = vcmp.lt.s32.totalorder %v1793_v51, %v1330_v7  ;;  %vm2721_vm1 = vmpackc.low %vm1830_vm6, %vm1821_vm0  ;;  %v136_v27 = vadd.s32 432, %v1318_v3 }
  0x9d   :  { %v2929_v60 = vsel %vm1830_vm6, 4294967295, %v2928_v60  ;;  %633 = vst [vmem:[#allocation1] ss:$4 sm:$0xff] %v1813_v47  ;;  %925 = vmatpush.bf16.msk.msra.mxu0 %vm2721_vm1, %v2925_v0  ;;  %vm1850_vm5 = vmand %vm171_vm11, %vm236_vm12  ;;  %v2930_v17 = vmov 0  ;;  %vm187_vm2 = vcmp.ge.s32.totalorder %v120_v63, %v1321_v4  ;;  %vm252_vm3 = vcmp.lt.s32.totalorder %v120_v63, %v1330_v7 }
  0x9e   :  { %v2931_v17 = vsel %vm1850_vm5, 4294967295, %v2930_v17  ;;  %v137_v53 = vadd.s32 440, %v1318_v3  ;;  %vm1857_vm13 = vmand %vm172_vm8, %vm237_vm15  ;;  %v2932_v51 = vmov 0  ;;  %vm188_vm9 = vcmp.ge.s32.totalorder %v121_v15, %v1321_v4 }
  0x9f   :  { %v2933_v51 = vsel %vm1857_vm13, 4294967295, %v2932_v51  ;;  %vm253_vm10 = vcmp.lt.s32.totalorder %v121_v15, %v1330_v7  ;;  %vm2742_vm11 = vmpackc.low %vm1857_vm13, %vm1850_vm5  ;;  %v1868_v33 = vadd.s32 32, %v1318_v3  ;;  %v2935_v63 = vmov 0 }
  0xa0   :  { %941 = vmatpush.bf16.msk.msra.mxu1 %vm2742_vm11, %v2925_v0  ;;  %vm1876_vm8 = vmand %vm187_vm2, %vm252_vm3  ;;  %vm203_vm12 = vcmp.ge.s32.totalorder %v136_v27, %v1321_v4  ;;  %vm268_vm15 = vcmp.lt.s32.totalorder %v136_v27, %v1330_v7  ;;  %v1883_v15 = vadd.s32 40, %v1318_v3  ;;  %vm204_vm0 = vcmp.ge.s32.totalorder %v137_v53, %v1321_v4 }
  0xa1   :  { %2934 = vst [vmem:[#allocation36_spill] sm:$0xff] %v1868_v33  ;;  %v2936_v63 = vsel %vm1876_vm8, 4294967295, %v2935_v63  ;;  %vm1885_vm1 = vmand %vm188_vm9, %vm253_vm10  ;;  %vm269_vm5 = vcmp.lt.s32.totalorder %v137_v53, %v1330_v7  ;;  %v1899_v27 = vadd.s32 168, %v1318_v3  ;;  %v118_v58 = vadd.s32 288, %v1318_v3 }
  0xa2   :  { %2937 = vst [vmem:[#allocation37_spill] sm:$0xff] %v1883_v15  ;;  %v2939_v62 = vsel %vm1885_vm1, 4294967295, %v2938_v62  ;;  %vm2747_vm3 = vmpackc.low %vm1885_vm1, %vm1876_vm8  ;;  %vm153_vm9 = vcmp.ge.s32.totalorder %v1868_v33, %v1321_v4  ;;  %vm218_vm2 = vcmp.lt.s32.totalorder %v1868_v33, %v1330_v7  ;;  %vm234_vm8 = vcmp.lt.s32.totalorder %v1896_v49, %v1330_v7 }
  0xa3   :  { %2941 = vst [vmem:[#allocation39_spill] sm:$0xff] %v1899_v27  ;;  %957 = vmatpush.bf16.msk.msra.mxu2 %vm2747_vm3, %v2925_v0  ;;  %vm1908_vm10 = vmand %vm203_vm12, %vm268_vm15  ;;  %vm154_vm12 = vcmp.ge.s32.totalorder %v1883_v15, %v1321_v4  ;;  %vm219_vm15 = vcmp.lt.s32.totalorder %v1883_v15, %v1330_v7  ;;  %v2949_v15 = vmov 0 }
  0xa4   :  { %v634_v56 = vld.sshfl [vmem:[#allocation1] sm:$0xff pattern:$0x73625140]  ;;  %v635_v54 = vld.sshfl [vmem:[#allocation1 + $0x8] sm:$0xff pattern:$0x73625140]  ;;  %vm1920_vm11 = vmand %vm204_vm0, %vm269_vm5  ;;  %vm250_vm5 = vcmp.lt.s32.totalorder %v118_v58, %v1330_v7 }
  0xa5   :  { %v2943_v41 = vsel %vm1908_vm10, 4294967295, %v2942_v41  ;;  %v636_v39 = vld.sshfl [vmem:[#allocation1 + $0x10] sm:$0xff pattern:$0x73625140]  ;;  %v1916_v35 = vpack.c.bf16 %v635_v54, %v634_v56  ;;  %v2945_v25 = vsel %vm1920_vm11, 4294967295, %v2944_v25  ;;  %vm2756_vm3 = vmpackc.low %vm1920_vm11, %vm1908_vm10  ;;  %v2947_v56 = vmov 0 }
  0xa6   :  { %v637_v37 = vld.sshfl [vmem:[#allocation1 + $0x18] sm:$0xff pattern:$0x73625140]  ;;  %973 = vmatpush.bf16.msk.msra.mxu3 %vm2756_vm3, %v2925_v0  ;;  %vm1941_vm0 = vmand %vm153_vm9, %vm218_vm2  ;;  %vm170_vm9 = vcmp.ge.s32.totalorder %v1899_v27, %v1321_v4  ;;  %vm235_vm2 = vcmp.lt.s32.totalorder %v1899_v27, %v1330_v7  ;;  %vm2954_vm10 = vcmask 1041408   ;;  %v2955_v27 = vmov 0 }
  0xa7   :  { %v1928_v23 = vpack.c.bf16 %v637_v37, %v636_v39  ;;  %v645_v54 = vunpack.c.h.bf16 %v1916_v35  ;;  %v2948_v56 = vsel %vm1941_vm0, 4294967295, %v2947_v56  ;;  %v119_v37 = vadd.s32 296, %v1318_v3  ;;  %vm1952_vm1 = vmand %vm154_vm12, %vm219_vm15 }
  0xa8   :  { %v2950_v15 = vsel %vm1952_vm1, 4294967295, %v2949_v15  ;;  %v644_v33 = vunpack.c.l.bf16 %v1916_v35  ;;  %vm2767_vm3 = vmpackc.low %vm1952_vm1, %vm1941_vm0  ;;  %vm2951_vm12 = vcmp.ge.s32.totalorder %v1896_v49, %v1321_v4  ;;  %vm2957_vm1 = vcmask 1045508  }
  0xa9   :  { %2946 = vst [vmem:[#allocation40_spill] sm:$0xff] %v1928_v23  ;;  %v646_v39 = vunpack.c.l.bf16 %v1928_v23  ;;  %v647_v53 = vunpack.c.h.bf16 %v1928_v23  ;;  %v652_v21 = vrot.slane %v645_v54, 6  ;;  %927 = vmatpush.bf16.msk.msra.mxu0 %vm2767_vm3, %v2925_v0  ;;  %vm1979_vm15 = vmand %vm2951_vm12, %vm234_vm8  ;;  %v2952_v54 = vmov 0 }
  0xaa   :  { %v2953_v54 = vsel %vm1979_vm15, 4294967295, %v2952_v54  ;;  %vm1986_vm11 = vmand %vm170_vm9, %vm235_vm2  ;;  %vm186_vm3 = vcmp.ge.s32.totalorder %v119_v37, %v1321_v4  ;;  %vm251_vm0 = vcmp.lt.s32.totalorder %v119_v37, %v1330_v7  ;;  %vm2959_vm12 = vcmask 1043456  }
  0xab   :  { %v653_v9 = vrot.slane %v646_v39, 4  ;;  %v654_v8 = vrot.slane %v647_v53, 2  ;;  %v135_v39 = vadd.s32 424, %v1318_v3  ;;  %v655_v53 = vsel %vm2954_vm10, %v644_v33, %v652_v21  ;;  %vm2774_vm8 = vmpackc.low %vm1986_vm11, %vm1979_vm15 }
  0xac   :  { %v2956_v27 = vsel %vm1986_vm11, 4294967295, %v2955_v27  ;;  %943 = vmatpush.bf16.msk.msra.mxu1 %vm2774_vm8, %v2925_v0  ;;  %vm2960_vm10 = vcmp.ge.s32.totalorder %v118_v58, %v1321_v4  ;;  %vm201_vm9 = vcmp.ge.s32.totalorder %v134_v19, %v1321_v4  ;;  %vm266_vm2 = vcmp.lt.s32.totalorder %v134_v19, %v1330_v7 }
  0xad   :  { %v656_v49 = vsel %vm2957_vm1, %v653_v9, %v654_v8  ;;  %vm2009_vm1 = vmand %vm2960_vm10, %vm250_vm5  ;;  %v2961_v8 = vmov 0  ;;  %v2016_v9 = vadd.s32 24, %v1318_v3  ;;  %v2964_v33 = vmov 0 }
  0xae   :  { %v657_v21 = vsel %vm2959_vm12, %v655_v53, %v656_v49  ;;  %v2962_v8 = vsel %vm2009_vm1, 4294967295, %v2961_v8  ;;  %vm2019_vm12 = vmand %vm186_vm3, %vm251_vm0  ;;  %vm202_vm8 = vcmp.ge.s32.totalorder %v135_v39, %v1321_v4  ;;  %vm267_vm5 = vcmp.lt.s32.totalorder %v135_v39, %v1330_v7 }
  0xaf   :  { %2963 = vst [vmem:[#allocation42_spill] sm:$0xff] %v2016_v9  ;;  %v659_v49 = vsub.f32 %v1813_v47, %v657_v21  ;;  %v2965_v33 = vsel %vm2019_vm12, 4294967295, %v2964_v33  ;;  %vm2777_vm10 = vmpackc.low %vm2019_vm12, %vm2009_vm1  ;;  %v2030_v19 = vadd.s32 144, %v1318_v3  ;;  %v2967_v58 = vmov 0 }
  0xb0   :  { %959 = vmatpush.bf16.msk.msra.mxu2 %vm2777_vm10, %v2925_v0  ;;  %vm2038_vm3 = vmand %vm201_vm9, %vm266_vm2  ;;  %vm151_vm0 = vcmp.ge.s32.totalorder %v1998_v6, %v1321_v4  ;;  %vm216_vm15 = vcmp.lt.s32.totalorder %v1998_v6, %v1330_v7  ;;  %v2047_v47 = vadd.s32 152, %v1318_v3  ;;  %v2971_v37 = vmov 0 }
  0xb1   :  { %2966 = vst [vmem:[#allocation43_spill] sm:$0xff] %v2030_v19  ;;  %v2968_v58 = vsel %vm2038_vm3, 4294967295, %v2967_v58  ;;  %vm2049_vm11 = vmand %vm202_vm8, %vm267_vm5  ;;  %vm152_vm10 = vcmp.ge.s32.totalorder %v2016_v9, %v1321_v4  ;;  %vm217_vm9 = vcmp.lt.s32.totalorder %v2016_v9, %v1330_v7  ;;  %v116_v39 = vadd.s32 272, %v1318_v3 }
  0xb2   :  { %661 = vst [vmem:[#allocation1] ss:$4 sm:$0xff] %v659_v49  ;;  %v2972_v37 = vsel %vm2049_vm11, 4294967295, %v2971_v37  ;;  %vm2785_vm2 = vmpackc.low %vm2049_vm11, %vm2038_vm3  ;;  %v2974_v53 = vmov 0  ;;  %vm167_vm5 = vcmp.ge.s32.totalorder %v2030_v19, %v1321_v4  ;;  %vm232_vm1 = vcmp.lt.s32.totalorder %v2030_v19, %v1330_v7 }
  0xb3   :  { %2969 = vst [vmem:[#allocation44_spill] sm:$0xff] %v2968_v58  ;;  %975 = vmatpush.bf16.msk.msra.mxu3 %vm2785_vm2, %v2925_v0  ;;  %vm2068_vm8 = vmand %vm151_vm0, %vm216_vm15  ;;  %v117_v21 = vadd.s32 280, %v1318_v3  ;;  %v2976_v49 = vmov 0  ;;  %vm168_vm3 = vcmp.ge.s32.totalorder %v2047_v47, %v1321_v4  ;;  %vm233_vm15 = vcmp.lt.s32.totalorder %v2047_v47, %v1330_v7  ;;  %v3111_v58 = vld [vmem:[#allocation17_spill] sm:$0xff] }
  0xb4   :  { %2970 = vst [vmem:[#allocation45_spill] sm:$0xff] %v2047_v47  ;;  %v2975_v53 = vsel %vm2068_vm8, 4294967295, %v2974_v53  ;;  %vm2077_vm12 = vmand %vm152_vm10, %vm217_vm9  ;;  %v132_v9 = vadd.s32 400, %v1318_v3  ;;  %v2978_v19 = vmov 0  ;;  %vm183_vm9 = vcmp.ge.s32.totalorder %v116_v39, %v1321_v4 }
  0xb5   :  { %2973 = vst [vmem:[#allocation46_spill] sm:$0xff] %v2972_v37  ;;  %v2977_v49 = vsel %vm2077_vm12, 4294967295, %v2976_v49  ;;  %vm2793_vm0 = vmpackc.low %vm2077_vm12, %vm2068_vm8  ;;  %vm248_vm2 = vcmp.lt.s32.totalorder %v116_v39, %v1330_v7  ;;  %v133_v47 = vadd.s32 408, %v1318_v3  ;;  %v2981_v6 = vmov 0  ;;  %v3112_v37 = vld [vmem:[#allocation18_spill] sm:$0xff] }
  0xb6   :  { %929 = vmatpush.bf16.msk.msra.mxu0 %vm2793_vm0, %v2925_v0  ;;  %vm2096_vm10 = vmand %vm167_vm5, %vm232_vm1  ;;  %vm184_vm13 = vcmp.ge.s32.totalorder %v117_v21, %v1321_v4  ;;  %vm249_vm6 = vcmp.lt.s32.totalorder %v117_v21, %v1330_v7  ;;  %v2983_v39 = vmov 0  ;;  %vm199_vm5 = vcmp.ge.s32.totalorder %v132_v9, %v1321_v4 }
  0xb7   :  { %v2979_v19 = vsel %vm2096_vm10, 4294967295, %v2978_v19  ;;  %vm2103_vm11 = vmand %vm168_vm3, %vm233_vm15  ;;  %vm264_vm15 = vcmp.lt.s32.totalorder %v132_v9, %v1330_v7  ;;  %v2126_v21 = vadd.s32 8, %v1318_v3  ;;  %vm200_vm8 = vcmp.ge.s32.totalorder %v133_v47, %v1321_v4 }
  0xb8   :  { %2980 = vst [vmem:[#allocation47_spill] sm:$0xff] %v2979_v19  ;;  %v2982_v6 = vsel %vm2103_vm11, 4294967295, %v2981_v6  ;;  %vm2799_vm1 = vmpackc.low %vm2103_vm11, %vm2096_vm10  ;;  %vm265_vm10 = vcmp.lt.s32.totalorder %v133_v47, %v1330_v7  ;;  %v2991_v9 = vmov 0  ;;  %v2156_v47 = vadd.s32 136, %v1318_v3 }
  0xb9   :  { %945 = vmatpush.bf16.msk.msra.mxu1 %vm2799_vm1, %v2925_v0  ;;  %vm2119_vm3 = vmand %vm183_vm9, %vm248_vm2  ;;  %2986 = vst [vmem:[#allocation49_spill] sm:$0xff] %v2126_v21  ;;  %vm214_vm9 = vcmp.lt.s32.totalorder %v1318_v3, %v1330_v7  ;;  %v2995_v23 = vmov 0  ;;  %v3002_v19 = vmov 0  ;;  %v664_v11 = vld.sshfl [vmem:[#allocation1 + $0x10] sm:$0xff pattern:$0x73625140] }
  0xba   :  { %v2984_v39 = vsel %vm2119_vm3, 4294967295, %v2983_v39  ;;  %vm2128_vm0 = vmand %vm184_vm13, %vm249_vm6  ;;  %vm149_vm6 = vcmp.ge.s32.totalorder %v1318_v3, %v1321_v4  ;;  %2994 = vst [vmem:[#allocation53_spill] sm:$0xff] %v2156_v47 }
  0xbb   :  { %2985 = vst [vmem:[#allocation48_spill] sm:$0xff] %v2984_v39  ;;  %v2988_v5 = vsel %vm2128_vm0, 4294967295, %v2987_v5  ;;  %vm2802_vm2 = vmpackc.low %vm2128_vm0, %vm2119_vm3  ;;  %v114_v39 = vadd.s32 256, %v1318_v3  ;;  %vm230_vm3 = vcmp.lt.s32.totalorder %v2139_v2, %v1330_v7 }
  0xbc   :  { %2989 = vst [vmem:[#allocation50_spill] sm:$0xff] %v2988_v5  ;;  %961 = vmatpush.bf16.msk.msra.mxu2 %vm2802_vm2, %v2925_v0  ;;  %vm2147_vm13 = vmand %vm199_vm5, %vm264_vm15  ;;  %vm150_vm2 = vcmp.ge.s32.totalorder %v2126_v21, %v1321_v4  ;;  %vm215_vm5 = vcmp.lt.s32.totalorder %v2126_v21, %v1330_v7  ;;  %v662_v5 = vld.sshfl [vmem:[#allocation1] sm:$0xff pattern:$0x73625140]  ;;  %v115_v21 = vadd.s32 264, %v1318_v3 }
  0xbd   :  { %v2992_v9 = vsel %vm2147_vm13, 4294967295, %v2991_v9  ;;  %vm2158_vm1 = vmand %vm200_vm8, %vm265_vm10  ;;  %vm165_vm10 = vcmp.ge.s32.totalorder %v2139_v2, %v1321_v4  ;;  %v670_v2 = vpack.c.bf16 %v662_v5, %v662_v5  ;;  %v3117_v5 = vld [vmem:[#allocation23_spill] sm:$0xff] }
  0xbe   :  { %2993 = vst [vmem:[#allocation52_spill] sm:$0xff] %v2992_v9  ;;  %v2996_v23 = vsel %vm2158_vm1, 4294967295, %v2995_v23  ;;  %vm2817_vm15 = vmpackc.low %vm2158_vm1, %vm2147_vm13  ;;  %vm166_vm13 = vcmp.ge.s32.totalorder %v2156_v47, %v1321_v4  ;;  %v130_v9 = vadd.s32 384, %v1318_v3  ;;  %vm182_vm11 = vcmp.ge.s32.totalorder %v115_v21, %v1321_v4 }
  0xbf   :  { %2997 = vst [vmem:[#allocation54_spill] sm:$0xff] %v2996_v23  ;;  %977 = vmatpush.bf16.msk.msra.mxu3 %vm2817_vm15, %v2925_v0  ;;  %vm2177_vm8 = vmand %vm149_vm6, %vm214_vm9  ;;  %vm231_vm6 = vcmp.lt.s32.totalorder %v2156_v47, %v1330_v7  ;;  %v663_v23 = vld.sshfl [vmem:[#allocation1 + $0x8] sm:$0xff pattern:$0x73625140]  ;;  %vm246_vm15 = vcmp.lt.s32.totalorder %v114_v39, %v1330_v7  ;;  %v131_v47 = vadd.s32 392, %v1318_v3  ;;  %vm247_vm12 = vcmp.lt.s32.totalorder %v115_v21, %v1330_v7 }
  0xc0   :  { %vm2186_vm0 = vmand %vm150_vm2, %vm215_vm5  ;;  %vm181_vm5 = vcmp.ge.s32.totalorder %v114_v39, %v1321_v4  ;;  %v671_v39 = vpack.c.bf16 %v663_v23, %v663_v23  ;;  %v729_v23 = vunpack.c.h.b16 %v1916_v35  ;;  %v3119_v21 = vld [vmem:[#allocation25_spill] sm:$0xff] }
  0xc1   :  { %vm2823_vm9 = vmpackc.low %vm2186_vm0, %vm2177_vm8 }
  0xc2   :  { %931 = vmatpush.bf16.msk.msra.mxu0 %vm2823_vm9, %v2925_v0  ;;  %vm2205_vm2 = vmand %vm165_vm10, %vm230_vm3  ;;  %vm263_vm9 = vcmp.lt.s32.totalorder %v131_v47, %v1330_v7 }
  0xc3   :  { %v3003_v19 = vsel %vm2205_vm2, 4294967295, %v3002_v19  ;;  %vm2212_vm1 = vmand %vm166_vm13, %vm231_vm6 }
  0xc4   :  { %vm3006_vm3 = vmpackc.low %vm1356_vm7, %vm1347_vm4  ;;  %vm197_vm4 = vcmp.ge.s32.totalorder %v130_v9, %v1321_v4  ;;  %vm262_vm7 = vcmp.lt.s32.totalorder %v130_v9, %v1330_v7  ;;  %v672_v7 = vpack.c.bf16 %v664_v11, %v664_v11  ;;  %v3115_v9 = vld [vmem:[#allocation21_spill] sm:$0xff]  ;;  %v3120_v11 = vld [vmem:[#allocation26_spill] sm:$0xff] }
  0xc5   :  { %vm2824_vm10 = vmpackc.low %vm2212_vm1, %vm2205_vm2  ;;  %682 = vmatmul.bf16.vlgmr.msra.gmra.mxu0 %v670_v2  ;;  %v665_v2 = vld.sshfl [vmem:[#allocation1 + $0x18] sm:$0xff pattern:$0x73625140] }
  0xc6   :  { %981 = vmatpush.bf16.msk.msrb.mxu0 %vm3006_vm3, %v2925_v0  ;;  %947 = vmatpush.bf16.msk.msra.mxu1 %vm2824_vm10, %v2925_v0  ;;  %vm2234_vm13 = vmand %vm181_vm5, %vm246_vm15  ;;  %vm198_vm3 = vcmp.ge.s32.totalorder %v131_v47, %v1321_v4  ;;  %vm3011_vm15 = vnez %v2839_v16  ;;  %v3016_v4 = vmov 0  ;;  %v673_v18 = vpack.c.bf16 %v665_v2, %v665_v2  ;;  %v3116_v47 = vld [vmem:[#allocation22_spill] sm:$0xff]  ;;  %v3122_v2 = vld [vmem:[#allocation28_spill] sm:$0xff] }
  0xc7   :  { %vm2240_vm6 = vmand %vm182_vm11, %vm247_vm12  ;;  %vm3013_vm11 = vnez %v2857_v30  ;;  %vm3014_vm12 = vnez %v2855_v28  ;;  %v3095_v28 = vld [vmem:[#allocation48_spill] sm:$0xff]  ;;  %v3125_v16 = vld [vmem:[#allocation31_spill] sm:$0xff] }
  0xc8   :  { %vm3012_vm5 = vmpackc.low %vm1382_vm14, %vm3011_vm15  ;;  %v3100_v30 = vld [vmem:[#allocation40_spill] sm:$0xff] }
  0xc9   :  { %vm2827_vm10 = vmpackc.low %vm2240_vm6, %vm2234_vm13  ;;  %695 = vmatmul.bf16.vlgmr.msra.gmra.mxu1 %v671_v39  ;;  %v3118_v39 = vld [vmem:[#allocation24_spill] sm:$0xff] }
  0xca   :  { %997 = vmatpush.bf16.msk.msrb.mxu1 %vm3012_vm5, %v2925_v0  ;;  %vm3015_vm2 = vmpackc.low %vm3013_vm11, %vm3014_vm12  ;;  %963 = vmatpush.bf16.msk.msra.mxu2 %vm2827_vm10, %v2925_v0  ;;  %vm3021_vm5 = vnez %v2844_v20  ;;  %vm3026_vm12 = vnez %v2877_v46  ;;  %v728_v20 = vunpack.c.l.b16 %v1916_v35  ;;  %v3101_v35 = vld [vmem:[#allocation54_spill] sm:$0xff] }
  0xcb   :  { %983 = vmatpush.bf16.msk.msrb.mxu0 %vm3015_vm2, %v2925_v0  ;;  %vm2268_vm14 = vmand %vm197_vm4, %vm262_vm7  ;;  %vm3020_vm2 = vnez %v2847_v22  ;;  %vm3023_vm7 = vnez %v2861_v34  ;;  %v3084_v22 = vld [vmem:[#allocation47_spill] sm:$0xff]  ;;  %v733_v34 = vpack.c.b16 %v729_v23, %v729_v23 }
  0xcc   :  { %v3017_v4 = vsel %vm2268_vm14, 4294967295, %v3016_v4  ;;  %vm2272_vm15 = vmand %vm198_vm3, %vm263_vm9  ;;  %vm3024_vm9 = vnez %v2859_v32  ;;  %v730_v32 = vunpack.c.l.b16 %v3100_v30  ;;  %v3129_v23 = vld [vmem:[#allocation35_spill] sm:$0xff] }
  0xcd   :  { %vm3022_vm11 = vmpackc.low %vm3020_vm2, %vm3021_vm5  ;;  %vm3027_vm2 = vnez %v2875_v44  ;;  %708 = vmatmul.bf16.vlgmr.msra.gmra.mxu2 %v672_v7  ;;  %v3124_v7 = vld [vmem:[#allocation30_spill] sm:$0xff] }
  0xce   :  { %1013 = vmatpush.bf16.msk.msrb.mxu2 %vm3022_vm11, %v2925_v0  ;;  %vm2826_vm4 = vmpackc.low %vm2272_vm15, %vm2268_vm14  ;;  %vm3029_vm11 = vnez %v2853_v26  ;;  %vm3035_vm14 = vnez %v2881_v52  ;;  %v3093_v26 = vld [vmem:[#allocation50_spill] sm:$0xff] }
  0xcf   :  { %vm3025_vm3 = vmpackc.low %vm3023_vm7, %vm3024_vm9  ;;  %979 = vmatpush.bf16.msk.msra.mxu3 %vm2826_vm4, %v2925_v0  ;;  %vm3030_vm7 = vnez %v2850_v24  ;;  %vm3033_vm4 = vnez %v2864_v36  ;;  %v3088_v24 = vld [vmem:[#allocation46_spill] sm:$0xff]  ;;  %v3103_v36 = vld [vmem:[#allocation52_spill] sm:$0xff] }
  0xd0   :  { %999 = vmatpush.bf16.msk.msrb.mxu1 %vm3025_vm3, %v2925_v0  ;;  %vm3028_vm5 = vmpackc.low %vm3026_vm12, %vm3027_vm2  ;;  %vm3032_vm3 = vnez %v2867_v38  ;;  %vm3036_vm12 = vnez %v2879_v50  ;;  %v731_v38 = vunpack.c.h.b16 %v3100_v30  ;;  %v3137_v30 = vld [vmem:[#allocation39_spill] sm:$0xff] }
  0xd1   :  { %985 = vmatpush.bf16.msk.msrb.mxu0 %vm3028_vm5, %v2925_v0  ;;  %vm3031_vm9 = vmpackc.low %vm3029_vm11, %vm3030_vm7  ;;  %vm3038_vm5 = vnez %v2902_v29  ;;  %vm3039_vm11 = vnez %v2899_v14 }
  0xd2   :  { %vm3034_vm10 = vmpackc.low %vm3032_vm3, %vm3033_vm4  ;;  %721 = vmatmul.bf16.vlgmr.msra.gmra.mxu3 %v673_v18  ;;  %vm3044_vm3 = vnez %v2887_v57  ;;  %v3126_v18 = vld [vmem:[#allocation32_spill] sm:$0xff] }
  0xd3   :  { %1029 = vmatpush.bf16.msk.msrb.mxu3 %vm3031_vm9, %v2925_v0  ;;  %1015 = vmatpush.bf16.msk.msrb.mxu2 %vm3034_vm10, %v2925_v0  ;;  %vm3037_vm2 = vmpackc.low %vm3035_vm14, %vm3036_vm12  ;;  %vm3041_vm9 = vnez %v2873_v42  ;;  %vm3042_vm10 = vnez %v2870_v40  ;;  %vm3045_vm14 = vnez %v2884_v55  ;;  %v734_v40 = vpack.c.b16 %v730_v32, %v730_v32  ;;  %v3138_v32 = vld [vmem:[#allocation41_spill] sm:$0xff] }
  0xd4   :  { %1001 = vmatpush.bf16.msk.msrb.mxu1 %vm3037_vm2, %v2925_v0  ;;  %vm3040_vm7 = vmpackc.low %vm3038_vm5, %vm3039_vm11  ;;  %vm3047_vm2 = vnez %v2907_v48  ;;  %vm3048_vm5 = vnez %v2905_v45 }
  0xd5   :  { %987 = vmatpush.bf16.msk.msrb.mxu0 %vm3040_vm7, %v2925_v0  ;;  %vm3043_vm4 = vmpackc.low %vm3041_vm9, %vm3042_vm10  ;;  %vm3050_vm7 = vnez %v2929_v60  ;;  %vm3051_vm9 = vnez %v2927_v12  ;;  %v78_v12 = vld [vmem:[#allocation7] sm:$0x3] }
  0xd6   :  { %vm3046_vm12 = vmpackc.low %vm3044_vm3, %vm3045_vm14  ;;  %vm3054_vm3 = vnez %v2890_v59 }
  0xd7   :  { %1031 = vmatpush.bf16.msk.msrb.mxu3 %vm3043_vm4, %v2925_v0  ;;  %1017 = vmatpush.bf16.msk.msrb.mxu2 %vm3046_vm12, %v2925_v0  ;;  %vm3049_vm11 = vmpackc.low %vm3047_vm2, %vm3048_vm5  ;;  %vm3053_vm4 = vnez %v2893_v1  ;;  %vm3056_vm12 = vnez %v2914_v10  ;;  %vm3057_vm2 = vnez %v2911_v61 }
  0xd8   :  { %1003 = vmatpush.bf16.msk.msrb.mxu1 %vm3049_vm11, %v2925_v0  ;;  %vm3052_vm10 = vmpackc.low %vm3050_vm7, %vm3051_vm9  ;;  %vm3059_vm11 = vnez %v2933_v51  ;;  %vm3060_vm7 = vnez %v2931_v17 }
  0xd9   :  { %989 = vmatpush.bf16.msk.msrb.mxu0 %vm3052_vm10, %v2925_v0  ;;  %vm3055_vm14 = vmpackc.low %vm3053_vm4, %vm3054_vm3  ;;  %vm3062_vm10 = vnez %v2950_v15  ;;  %vm3063_vm4 = vnez %v2948_v56 }
  0xda   :  { %vm3058_vm5 = vmpackc.low %vm3056_vm12, %vm3057_vm2  ;;  %vm3066_vm12 = vnez %v2917_v43 }
  0xdb   :  { %1033 = vmatpush.bf16.msk.msrb.mxu3 %vm3055_vm14, %v2925_v0  ;;  %1019 = vmatpush.bf16.msk.msrb.mxu2 %vm3058_vm5, %v2925_v0  ;;  %vm3061_vm9 = vmpackc.low %vm3059_vm11, %vm3060_vm7  ;;  %vm3065_vm14 = vnez %v2923_v31  ;;  %vm3068_vm5 = vnez %v2939_v62  ;;  %vm3069_vm11 = vnez %v2936_v63 }
  0xdc   :  { %1005 = vmatpush.bf16.msk.msrb.mxu1 %vm3061_vm9, %v2925_v0  ;;  %vm3064_vm3 = vmpackc.low %vm3062_vm10, %vm3063_vm4  ;;  %vm3071_vm9 = vnez %v2956_v27  ;;  %vm3072_vm10 = vnez %v2953_v54  ;;  %v3109_v54 = vld [vmem:[#allocation15_spill] sm:$0xff] }
  0xdd   :  { %991 = vmatpush.bf16.msk.msrb.mxu0 %vm3064_vm3, %v2925_v0  ;;  %vm3067_vm2 = vmpackc.low %vm3065_vm14, %vm3066_vm12  ;;  %vm3074_vm3 = vnez %v2977_v49  ;;  %vm3075_vm14 = vnez %v2975_v53  ;;  %v3113_v53 = vld [vmem:[#allocation19_spill] sm:$0xff]  ;;  %v3114_v49 = vld [vmem:[#allocation20_spill] sm:$0xff] }
  0xde   :  { %vm3070_vm7 = vmpackc.low %vm3068_vm5, %vm3069_vm11  ;;  %vm3078_vm5 = vnez %v2943_v41  ;;  %v735_v41 = vpack.c.b16 %v731_v38, %v731_v38  ;;  %v3142_v38 = vld [vmem:[#allocation49_spill] sm:$0xff] }
  0xdf   :  { %1035 = vmatpush.bf16.msk.msrb.mxu3 %vm3067_vm2, %v2925_v0  ;;  %1021 = vmatpush.bf16.msk.msrb.mxu2 %vm3070_vm7, %v2925_v0  ;;  %vm3073_vm4 = vmpackc.low %vm3071_vm9, %vm3072_vm10  ;;  %vm3077_vm2 = vnez %v2945_v25  ;;  %vm3080_vm7 = vnez %v2965_v33  ;;  %vm3081_vm9 = vnez %v2962_v8  ;;  %v3090_v25 = vld [vmem:[#allocation44_spill] sm:$0xff]  ;;  %v2473_v8 = vmul.u32 32, %v3109_v54 }
  0xe0   :  { %1007 = vmatpush.bf16.msk.msrb.mxu1 %vm3073_vm4, %v2925_v0  ;;  %vm3076_vm12 = vmpackc.low %vm3074_vm3, %vm3075_vm14  ;;  %vm3083_vm4 = vnez %v2982_v6  ;;  %vm3085_vm3 = vnez %v3084_v22  ;;  %v732_v6 = vpack.c.b16 %v728_v20, %v728_v20  ;;  %v3110_v33 = vld [vmem:[#allocation16_spill] sm:$0xff]  ;;  %v3127_v20 = vld [vmem:[#allocation33_spill] sm:$0xff] }
  0xe1   :  { %993 = vmatpush.bf16.msk.msrb.mxu0 %vm3076_vm12, %v2925_v0  ;;  %vm3079_vm11 = vmpackc.low %vm3077_vm2, %vm3078_vm5  ;;  %vm3089_vm2 = vnez %v3088_v24  ;;  %vm3091_vm5 = vnez %v3090_v25  ;;  %v3128_v22 = vld [vmem:[#allocation34_spill] sm:$0xff]  ;;  %v3132_v25 = vld [vmem:[#allocation36_spill] sm:$0xff] }
  0xe2   :  { %vm3082_vm10 = vmpackc.low %vm3080_vm7, %vm3081_vm9  ;;  %vm3094_vm7 = vnez %v3093_v26  ;;  %vm3096_vm9 = vnez %v3095_v28  ;;  %v3136_v28 = vld [vmem:[#allocation38_spill] sm:$0xff] }
  0xe3   :  { %1037 = vmatpush.bf16.msk.msrb.mxu3 %vm3079_vm11, %v2925_v0  ;;  %1023 = vmatpush.bf16.msk.msrb.mxu2 %vm3082_vm10, %v2925_v0  ;;  %vm3086_vm14 = vmpackc.low %vm3083_vm4, %vm3085_vm3  ;;  %vm3102_vm4 = vnez %v3101_v35  ;;  %vm3104_vm3 = vnez %v3103_v36  ;;  %v3140_v35 = vld [vmem:[#allocation43_spill] sm:$0xff]  ;;  %v3141_v36 = vld [vmem:[#allocation45_spill] sm:$0xff] }
  0xe4   :  { %1009 = vmatpush.bf16.msk.msrb.mxu1 %vm3086_vm14, %v2925_v0  ;;  %vm3087_vm12 = vmpackc.low %vm2186_vm0, %vm2177_vm8  ;;  %vm3098_vm0 = vnez %v3003_v19  ;;  %v2478_v19 = vadd.s32 32, %v2473_v8 }
  0xe5   :  { %995 = vmatpush.bf16.msk.msrb.mxu0 %vm3087_vm12, %v2925_v0  ;;  %vm3092_vm11 = vmpackc.low %vm3089_vm2, %vm3091_vm5 }
  0xe6   :  { %vm3097_vm10 = vmpackc.low %vm3094_vm7, %vm3096_vm9  ;;  %vm487_vm5 = vcmp.lt.s32.totalorder %v3111_v58, %v2478_v19  ;;  %vm469_vm7 = vcmp.ge.s32.totalorder %v3112_v37, %v2473_v8  ;;  %vm502_vm9 = vcmp.lt.s32.totalorder %v3112_v37, %v2478_v19 }
  0xe7   :  { %1039 = vmatpush.bf16.msk.msrb.mxu3 %vm3092_vm11, %v2925_v0  ;;  %1025 = vmatpush.bf16.msk.msrb.mxu2 %vm3097_vm10, %v2925_v0  ;;  %vm3099_vm8 = vmpackc.low %vm2212_vm1, %vm3098_vm0  ;;  %vm3107_vm1 = vnez %v3017_v4  ;;  %vm470_vm0 = vcmp.ge.s32.totalorder %v3113_v53, %v2473_v8  ;;  %v3123_v4 = vld [vmem:[#allocation29_spill] sm:$0xff] }
  0xe8   :  { %1011 = vmatpush.bf16.msk.msrb.mxu1 %vm3099_vm8, %v2925_v0  ;;  %748 = vmatmul.bf16.vlgmr.msrb.gmra.mxu0 %v732_v6  ;;  %vm3105_vm14 = vmpackc.low %vm3102_vm4, %vm3104_vm3  ;;  %vm503_vm8 = vcmp.lt.s32.totalorder %v3113_v53, %v2478_v19  ;;  %v3133_v6 = vld [vmem:[#allocation37_spill] sm:$0xff]  ;;  %v80_v53 = vld [vmem:[%s2666_s4] sm:$0x3] }
  0xe9   :  { %vm3106_vm12 = vmpackc.low %vm2240_vm6, %vm2234_vm13  ;;  %vm453_vm13 = vcmp.ge.s32.totalorder %v3110_v33, %v2473_v8  ;;  %vm454_vm6 = vcmp.ge.s32.totalorder %v3111_v58, %v2473_v8 }
  0xea   :  { %vm3108_vm2 = vmpackc.low %vm2272_vm15, %vm3107_vm1  ;;  %vm486_vm15 = vcmp.lt.s32.totalorder %v3110_v33, %v2478_v19 }
  0xeb   :  { %1041 = vmatpush.bf16.msk.msrb.mxu3 %vm3105_vm14, %v2925_v0  ;;  %1027 = vmatpush.bf16.msk.msrb.mxu2 %vm3106_vm12, %v2925_v0  ;;  %vm518_vm11 = vmand %vm453_vm13, %vm486_vm15  ;;  %vm451_vm14 = vcmp.ge.s32.totalorder %v3114_v49, %v2473_v8  ;;  %vm484_vm12 = vcmp.lt.s32.totalorder %v3114_v49, %v2478_v19  ;;  %vm485_vm13 = vcmp.lt.s32.totalorder %v3115_v9, %v2478_v19 }
  0xec   :  { %761 = vmatmul.bf16.vlgmr.msrb.gmra.mxu1 %v733_v34  ;;  %vm519_vm10 = vmand %vm454_vm6, %vm487_vm5  ;;  %vm467_vm5 = vcmp.ge.s32.totalorder %v3116_v47, %v2473_v8  ;;  %v3139_v34 = vld [vmem:[#allocation42_spill] sm:$0xff] }
  0xed   :  { %vm1044_vm4 = vmpackc.low %vm519_vm10, %vm518_vm11  ;;  %vm500_vm11 = vcmp.lt.s32.totalorder %v3116_v47, %v2478_v19  ;;  %vm501_vm10 = vcmp.lt.s32.totalorder %v3117_v5, %v2478_v19 }
  0xee   :  { %774 = vmatmul.bf16.vlgmr.msrb.gmra.mxu2 %v734_v40  ;;  %vm534_vm3 = vmand %vm469_vm7, %vm502_vm9  ;;  %1045 = vmatpush.bf16.msk.msra.mxu0 %vm1044_vm4, %v2925_v0  ;;  %vm468_vm9 = vcmp.ge.s32.totalorder %v3117_v5, %v2473_v8  ;;  %v3143_v40 = vld [vmem:[#allocation51_spill] sm:$0xff] }
  0xef   :  { %1043 = vmatpush.bf16.msk.msrb.mxu3 %vm3108_vm2, %v2925_v0  ;;  %1077 = vmatpush.bf16.msk.msra.mxu2 %vm1044_vm4, %v2925_v0  ;;  %vm535_vm1 = vmand %vm470_vm0, %vm503_vm8  ;;  %vm452_vm2 = vcmp.ge.s32.totalorder %v3115_v9, %v2473_v8  ;;  %vm449_vm4 = vcmp.ge.s32.totalorder %v3118_v39, %v2473_v8 }
  0xf0   :  { %vm1060_vm6 = vmpackc.low %vm535_vm1, %vm534_vm3  ;;  %vm482_vm3 = vcmp.lt.s32.totalorder %v3118_v39, %v2478_v19  ;;  %vm483_vm1 = vcmp.lt.s32.totalorder %v3119_v21, %v2478_v19 }
  0xf1   :  { %vm516_vm15 = vmand %vm451_vm14, %vm484_vm12  ;;  %1061 = vmatpush.bf16.msk.msra.mxu1 %vm1060_vm6, %v2925_v0  ;;  %vm450_vm12 = vcmp.ge.s32.totalorder %v3119_v21, %v2473_v8 }
  0xf2   :  { %787 = vmatmul.bf16.vlgmr.msrb.gmra.mxu3 %v735_v41  ;;  %vm517_vm7 = vmand %vm452_vm2, %vm485_vm13 }
  0xf3   :  { %1093 = vmatpush.bf16.msk.msra.mxu3 %vm1060_vm6, %v2925_v0  ;;  %vm1046_vm0 = vmpackc.low %vm517_vm7, %vm516_vm15  ;;  %vm465_vm6 = vcmp.ge.s32.totalorder %v3120_v11, %v2473_v8  ;;  %vm498_vm15 = vcmp.lt.s32.totalorder %v3120_v11, %v2478_v19  ;;  %vm499_vm7 = vcmp.lt.s32.totalorder %v3121_v13, %v2478_v19 }
  0xf4   :  { %1079 = vmatpush.bf16.msk.msra.mxu2 %vm1046_vm0, %v2925_v0  ;;  %vm532_vm8 = vmand %vm467_vm5, %vm500_vm11  ;;  %1047 = vmatpush.bf16.msk.msra.mxu0 %vm1046_vm0, %v2925_v0  ;;  %vm466_vm11 = vcmp.ge.s32.totalorder %v3121_v13, %v2473_v8 }
  0xf5   :  { %vm533_vm14 = vmand %vm468_vm9, %vm501_vm10 }
  0xf6   :  { %vm1062_vm2 = vmpackc.low %vm533_vm14, %vm532_vm8  ;;  %vm480_vm14 = vcmp.lt.s32.totalorder %v3122_v2, %v2478_v19 }
  0xf7   :  { %1095 = vmatpush.bf16.msk.msra.mxu3 %vm1062_vm2, %v2925_v0  ;;  %vm514_vm13 = vmand %vm449_vm4, %vm482_vm3  ;;  %1063 = vmatpush.bf16.msk.msra.mxu1 %vm1062_vm2, %v2925_v0  ;;  %vm447_vm4 = vcmp.ge.s32.totalorder %v3122_v2, %v2473_v8  ;;  %vm448_vm3 = vcmp.ge.s32.totalorder %v3123_v4, %v2473_v8  ;;  %vm463_vm2 = vcmp.ge.s32.totalorder %v3124_v7, %v2473_v8 }
  0xf8   :  { %vm515_vm5 = vmand %vm450_vm12, %vm483_vm1  ;;  %vm481_vm12 = vcmp.lt.s32.totalorder %v3123_v4, %v2478_v19 }
  0xf9   :  { %vm1048_vm9 = vmpackc.low %vm515_vm5, %vm514_vm13  ;;  %vm496_vm13 = vcmp.lt.s32.totalorder %v3124_v7, %v2478_v19  ;;  %vm497_vm5 = vcmp.lt.s32.totalorder %v3125_v16, %v2478_v19 }
  0xfa   :  { %1081 = vmatpush.bf16.msk.msra.mxu2 %vm1048_vm9, %v2925_v0  ;;  %vm530_vm10 = vmand %vm465_vm6, %vm498_vm15  ;;  %1049 = vmatpush.bf16.msk.msra.mxu0 %vm1048_vm9, %v2925_v0  ;;  %vm464_vm15 = vcmp.ge.s32.totalorder %v3125_v16, %v2473_v8  ;;  %vm445_vm9 = vcmp.ge.s32.totalorder %v3126_v18, %v2473_v8 }
  0xfb   :  { %vm531_vm0 = vmand %vm466_vm11, %vm499_vm7 }
  0xfc   :  { %vm1064_vm8 = vmpackc.low %vm531_vm0, %vm530_vm10  ;;  %vm478_vm10 = vcmp.lt.s32.totalorder %v3126_v18, %v2478_v19 }
  0xfd   :  { %1097 = vmatpush.bf16.msk.msra.mxu3 %vm1064_vm8, %v2925_v0  ;;  %1065 = vmatpush.bf16.msk.msra.mxu1 %vm1064_vm8, %v2925_v0  ;;  %vm512_vm1 = vmand %vm447_vm4, %vm480_vm14  ;;  %vm446_vm8 = vcmp.ge.s32.totalorder %v3127_v20, %v2473_v8  ;;  %vm479_vm4 = vcmp.lt.s32.totalorder %v3127_v20, %v2478_v19 }
  0xfe   :  { %vm513_vm6 = vmand %vm448_vm3, %vm481_vm12  ;;  %vm461_vm12 = vcmp.ge.s32.totalorder %v3128_v22, %v2473_v8 }
  0xff   :  { %vm1050_vm11 = vmpackc.low %vm513_vm6, %vm512_vm1  ;;  %vm494_vm1 = vcmp.lt.s32.totalorder %v3128_v22, %v2478_v19  ;;  %vm495_vm6 = vcmp.lt.s32.totalorder %v3129_v23, %v2478_v19 }
 0x100   :  { %1083 = vmatpush.bf16.msk.msra.mxu2 %vm1050_vm11, %v2925_v0  ;;  %vm528_vm7 = vmand %vm463_vm2, %vm496_vm13  ;;  %1051 = vmatpush.bf16.msk.msra.mxu0 %vm1050_vm11, %v2925_v0  ;;  %vm462_vm13 = vcmp.ge.s32.totalorder %v3129_v23, %v2473_v8  ;;  %vm443_vm11 = vcmp.ge.s32.totalorder %v3132_v25, %v2473_v8 }
 0x101   :  { %vm529_vm0 = vmand %vm464_vm15, %vm497_vm5 }
 0x102   :  { %vm1066_vm3 = vmpackc.low %vm529_vm0, %vm528_vm7  ;;  %vm476_vm7 = vcmp.lt.s32.totalorder %v3132_v25, %v2478_v19  ;;  %vm477_vm0 = vcmp.lt.s32.totalorder %v3133_v6, %v2478_v19 }
 0x103   :  { %1099 = vmatpush.bf16.msk.msra.mxu3 %vm1066_vm3, %v2925_v0  ;;  %vm510_vm14 = vmand %vm445_vm9, %vm478_vm10  ;;  %1067 = vmatpush.bf16.msk.msra.mxu1 %vm1066_vm3, %v2925_v0  ;;  %vm444_vm10 = vcmp.ge.s32.totalorder %v3133_v6, %v2473_v8  ;;  %vm459_vm3 = vcmp.ge.s32.totalorder %v3136_v28, %v2473_v8 }
 0x104   :  { %vm511_vm2 = vmand %vm446_vm8, %vm479_vm4 }
 0x105   :  { %vm1052_vm15 = vmpackc.low %vm511_vm2, %vm510_vm14  ;;  %vm492_vm14 = vcmp.lt.s32.totalorder %v3136_v28, %v2478_v19  ;;  %vm493_vm2 = vcmp.lt.s32.totalorder %v3137_v30, %v2478_v19 }
 0x106   :  { %1085 = vmatpush.bf16.msk.msra.mxu2 %vm1052_vm15, %v2925_v0  ;;  %vm2575_vm5 = vmand %vm461_vm12, %vm494_vm1  ;;  %1053 = vmatpush.bf16.msk.msra.mxu0 %vm1052_vm15, %v2925_v0  ;;  %vm460_vm1 = vcmp.ge.s32.totalorder %v3137_v30, %v2473_v8  ;;  %vm441_vm15 = vcmp.ge.s32.totalorder %v3138_v32, %v2473_v8 }
 0x107   :  { %vm527_vm9 = vmand %vm462_vm13, %vm495_vm6 }
 0x108   :  { %vm1068_vm8 = vmpackc.low %vm527_vm9, %vm2575_vm5  ;;  %vm474_vm5 = vcmp.lt.s32.totalorder %v3138_v32, %v2478_v19  ;;  %vm475_vm9 = vcmp.lt.s32.totalorder %v3139_v34, %v2478_v19 }
 0x109   :  { %1101 = vmatpush.bf16.msk.msra.mxu3 %vm1068_vm8, %v2925_v0  ;;  %vm2591_vm4 = vmand %vm443_vm11, %vm476_vm7  ;;  %1069 = vmatpush.bf16.msk.msra.mxu1 %vm1068_vm8, %v2925_v0  ;;  %vm442_vm7 = vcmp.ge.s32.totalorder %v3139_v34, %v2473_v8  ;;  %vm457_vm8 = vcmp.ge.s32.totalorder %v3140_v35, %v2473_v8 }
 0x10a   :  { %vm509_vm12 = vmand %vm444_vm10, %vm477_vm0 }
 0x10b   :  { %vm1054_vm13 = vmpackc.low %vm509_vm12, %vm2591_vm4  ;;  %vm490_vm4 = vcmp.lt.s32.totalorder %v3140_v35, %v2478_v19  ;;  %vm491_vm12 = vcmp.lt.s32.totalorder %v3141_v36, %v2478_v19 }
 0x10c   :  { %1087 = vmatpush.bf16.msk.msra.mxu2 %vm1054_vm13, %v2925_v0  ;;  %vm524_vm6 = vmand %vm459_vm3, %vm492_vm14  ;;  %1055 = vmatpush.bf16.msk.msra.mxu0 %vm1054_vm13, %v2925_v0  ;;  %vm458_vm14 = vcmp.ge.s32.totalorder %v3141_v36, %v2473_v8  ;;  %vm439_vm13 = vcmp.ge.s32.totalorder %v1318_v3, %v2473_v8 }
 0x10d   :  { %vm525_vm11 = vmand %vm460_vm1, %vm493_vm2 }
 0x10e   :  { %vm1070_vm10 = vmpackc.low %vm525_vm11, %vm524_vm6  ;;  %vm472_vm6 = vcmp.lt.s32.totalorder %v1318_v3, %v2478_v19  ;;  %vm473_vm11 = vcmp.lt.s32.totalorder %v3142_v38, %v2478_v19  ;;  %v3144_v3 = vld [vmem:[#allocation53_spill] sm:$0xff] }
 0x10f   :  { %1103 = vmatpush.bf16.msk.msra.mxu3 %vm1070_vm10, %v2925_v0  ;;  %vm506_vm0 = vmand %vm441_vm15, %vm474_vm5  ;;  %1071 = vmatpush.bf16.msk.msra.mxu1 %vm1070_vm10, %v2925_v0  ;;  %vm440_vm5 = vcmp.ge.s32.totalorder %v3142_v38, %v2473_v8  ;;  %vm455_vm10 = vcmp.ge.s32.totalorder %v3143_v40, %v2473_v8 }
 0x110   :  { %vm507_vm3 = vmand %vm442_vm7, %vm475_vm9 }
 0x111   :  { %vm1056_vm1 = vmpackc.low %vm507_vm3, %vm506_vm0  ;;  %vm488_vm0 = vcmp.lt.s32.totalorder %v3143_v40, %v2478_v19  ;;  %vm489_vm3 = vcmp.lt.s32.totalorder %v3144_v3, %v2478_v19 }
 0x112   :  { %1089 = vmatpush.bf16.msk.msra.mxu2 %vm1056_vm1, %v2925_v0  ;;  %vm522_vm2 = vmand %vm457_vm8, %vm490_vm4  ;;  %1057 = vmatpush.bf16.msk.msra.mxu0 %vm1056_vm1, %v2925_v0  ;;  %vm456_vm4 = vcmp.ge.s32.totalorder %v3144_v3, %v2473_v8 }
 0x113   :  { %vm523_vm15 = vmand %vm458_vm14, %vm491_vm12 }
 0x114   :  { %vm1072_vm7 = vmpackc.low %vm523_vm15, %vm522_vm2  ;;  %vm3147_vm15 = vcmask 785408  }
 0x115   :  { %1105 = vmatpush.bf16.msk.msra.mxu3 %vm1072_vm7, %v2925_v0  ;;  %vm504_vm9 = vmand %vm439_vm13, %vm472_vm6  ;;  %1073 = vmatpush.bf16.msk.msra.mxu1 %vm1072_vm7, %v2925_v0  ;;  %vm3145_vm13 = vcmask 261120   ;;  %vm3146_vm6 = vcmask 523264   ;;  %vm895_vm7 = vcmask 58368  }
 0x116   :  { %vm505_vm8 = vmand %vm440_vm5, %vm473_vm11  ;;  %vm3148_vm5 = vcmask 1041408  }
 0x117   :  { %vm1058_vm14 = vmpackc.low %vm505_vm8, %vm504_vm9 }
 0x118   :  { %1091 = vmatpush.bf16.msk.msra.mxu2 %vm1058_vm14, %v2925_v0  ;;  %vm520_vm12 = vmand %vm455_vm10, %vm488_vm0  ;;  %1059 = vmatpush.bf16.msk.msra.mxu0 %vm1058_vm14, %v2925_v0 }
 0x119   :  { %vm521_vm1 = vmand %vm456_vm4, %vm489_vm3 }
 0x11a   :  { %vm1074_vm2 = vmpackc.low %vm521_vm1, %vm520_vm12 }
 0x11b   :  { %1107 = vmatpush.bf16.msk.msra.mxu3 %vm1074_vm2, %v2925_v0  ;;  %1075 = vmatpush.bf16.msk.msra.mxu1 %vm1074_vm2, %v2925_v0  ;;  %vm3149_vm11 = vmmov %vm3148_vm5 }
 0x142   :  { %v683_v42 = vpop.f32.mrf.mxu0 }
 0x146   :  { %v696_v44 = vpop.f32.mrf.mxu1 }
 0x147   :  { %v697_v1 = vadd.f32 %v696_v44, %v683_v42 }
 0x14a   :  { %v685_v46 = vpop.f32.mrf.mxu0 }
 0x14e   :  { %v698_v50 = vpop.f32.mrf.mxu1 }
 0x150   :  { %v709_v52 = vpop.f32.mrf.mxu2 }
 0x151   :  { %v710_v29 = vadd.f32 %v709_v52, %v697_v1 }
 0x155   :  { %v722_v55 = vpop.f32.mrf.mxu3 }
 0x156   :  { %v723_v48 = vadd.f32 %v722_v55, %v710_v29  ;;  %v79_v55 = vld [vmem:[#allocation8] sm:$0xf] }
 0x158   :  { %v711_v57 = vpop.f32.mrf.mxu2 }
 0x15d   :  { %v724_v59 = vpop.f32.mrf.mxu3 }
 0x165   :  { %v749_v14 = vpop.f32.mrf.mxu0 }
 0x166   :  { %v750_v61 = vadd.f32 %v749_v14, %v723_v48 }
 0x169   :  { %v762_v45 = vpop.f32.mrf.mxu1 }
 0x16a   :  { %v763_v10 = vadd.f32 %v762_v45, %v750_v61 }
 0x16d   :  { %v751_v62 = vpop.f32.mrf.mxu0 }
 0x171   :  { %v764_v43 = vpop.f32.mrf.mxu1  ;;  %v775_v51 = vpop.f32.mrf.mxu2 }
 0x172   :  { %v776_v31 = vadd.f32 %v775_v51, %v763_v10 }
 0x175   :  { %v788_v60 = vpop.f32.mrf.mxu3 }
 0x176   :  { %v789_v17 = vadd.f32 %v788_v60, %v776_v31 }
 0x178   :  { %v792_v63 = vadd.f32 %v789_v17, %v78_v12 }
 0x179   :  { %v777_v27 = vpop.f32.mrf.mxu2 }
 0x17a   :  { %v2464_v15 = vmax.f32 %v792_v63, 0.0 }
 0x17c   :  { %801 = vrot.lane.b32.xlu0 %v2464_v15, %s1258_s14  ;;  %798 = vrot.lane.b32.xlu2 %v2464_v15, %s1257_s13 }
 0x17d   :  { %v790_v56 = vpop.f32.mrf.mxu3  ;;  %795 = vrot.lane.b32.xlu1 %v2464_v15, %s1256_s12 }
 0x1d6   :  { %v799_v42 = vpop.permute.xlu2 %798 }
 0x1ee   :  { %v802_v46 = vpop.permute.xlu0 %801 }
 0x1ef   :  { %v796_v41 = vpop.permute.xlu1 %795 }
 0x1f0   :  { %v804_v44 = vsel %vm3145_vm13, %v2464_v15, %v796_v41 }
 0x1f1   :  { %v805_v50 = vsel %vm3146_vm6, %v804_v44, %v799_v42 }
 0x1f2   :  { %v806_v52 = vsel %vm3147_vm15, %v805_v50, %v802_v46 }
 0x1f3   :  { %v808_v57 = vrot.slane %v806_v52, 6 }
 0x1f5   :  { %v809_v59 = vsel %vm3148_vm5, %v806_v52, %v808_v57 }
 0x1f6   :  { %v811_v1 = vmul.f32 %v809_v59, %v79_v55 }
 0x1f8   :  { %813 = vst [vmem:[#allocation1] ss:$4 sm:$0xff] %v811_v1 }
 0x1ff   :  { %v814_v14 = vld.sshfl [vmem:[#allocation1] sm:$0xff pattern:$0x73625140]  ;;  %v815_v29 = vld.sshfl [vmem:[#allocation1 + $0x8] sm:$0xff pattern:$0x73625140] }
 0x200   :  { %v818_v45 = vpack.c.bf16 %v815_v29, %v814_v14 }
 0x202   :  { %v820_v48 = vunpack.c.h.bf16 %v818_v45  ;;  %v862_v61 = vunpack.c.l.b16 %v818_v45  ;;  %v863_v62 = vunpack.c.h.b16 %v818_v45  ;;  %v819_v10 = vunpack.c.l.bf16 %v818_v45 }
 0x204   :  { %v823_v43 = vrot.slane %v820_v48, 6  ;;  %v864_v0 = vpack.c.b16 %v862_v61, %v862_v61  ;;  %v865_v51 = vpack.c.b16 %v863_v62, %v863_v62 }
 0x206   :  { %v824_v31 = vsel %vm3149_vm11, %v819_v10, %v823_v43  ;;  %876 = vmatmul.bf16.vlgmr.msra.gmra.mxu2 %v864_v0  ;;  %889 = vmatmul.bf16.vlgmr.msra.gmra.mxu3 %v865_v51 }
 0x207   :  { %v826_v12 = vsub.f32 %v811_v1, %v824_v31 }
 0x209   :  { %828 = vst [vmem:[#allocation1] ss:$4 sm:$0xff] %v826_v12 }
 0x210   :  { %v829_v60 = vld.sshfl [vmem:[#allocation1] sm:$0xff pattern:$0x73625140]  ;;  %v830_v17 = vld.sshfl [vmem:[#allocation1 + $0x8] sm:$0xff pattern:$0x73625140] }
 0x211   :  { %v833_v63 = vpack.c.bf16 %v829_v60, %v829_v60  ;;  %v834_v15 = vpack.c.bf16 %v830_v17, %v830_v17 }
 0x213   :  { %843 = vmatmul.bf16.vlgmr.msra.gmra.mxu0 %v833_v63  ;;  %856 = vmatmul.bf16.vlgmr.msra.gmra.mxu1 %v834_v15 }
 0x289   :  { %v877_v27 = vpop.f32.mrf.mxu2  ;;  %v890_v56 = vpop.f32.mrf.mxu3 }
 0x290   :  { %v844_v54 = vpop.f32.mrf.mxu0  ;;  %v857_v8 = vpop.f32.mrf.mxu1 }
 0x291   :  { %v858_v33 = vadd.f32 %v857_v8, %v844_v54  ;;  %v879_v19 = vpop.f32.mrf.mxu2  ;;  %v892_v58 = vpop.f32.mrf.mxu3 }
 0x293   :  { %v878_v37 = vadd.f32 %v877_v27, %v858_v33 }
 0x295   :  { %v891_v49 = vadd.f32 %v890_v56, %v878_v37 }
 0x297   :  { %v894_v9 = vadd.f32 %v891_v49, %v80_v53 }
 0x298   :  { %v846_v47 = vpop.f32.mrf.mxu0  ;;  %v859_v5 = vpop.f32.mrf.mxu1 }
 0x299   :  { %896 = vst.msk [vmem:[#allocation10] sm:$0x3] %vm895_vm7, %v894_v9 }
 0x29a   :  { %907 = dma.vmem_to_hbm [thread:$0]  %s903_s19, 32, %s905_s22, [#allocation4]  }
 0x29b   :  { %1247 = dma.done.wait [#allocation4], 32  }
 0x29c   :  { %1248 = vsyncadd [#allocation4], 4294967264 }
 0x29d   :  { %912 = vsyncpa [#allocation3], 1 }
 0x29e   :  { %913 = vsyncpa [#allocation6], 1 }
 0x29f   :  { %914 = vsyncpa [#allocation9], 1 }
 0x2a0   :  { %915 = vsyncpa [#allocation4], 1 }

</bundles_post_ra>
